<compile_context>
chip_gen: v6e
topology: v6e:2x2x1
jax: 0.10.0
libtpu: 0.0.40
codegen_flags: <defaults>
</compile_context>

<pallas_src>
import jax
import jax.numpy as jnp
from jax import lax
from jax.experimental import pallas as pl
from jax.experimental.pallas import tpu as pltpu

POOLING_R = 4            # SCBottleneck.pooling_r (butterfly below assumes 4)
MM_DTYPE = jnp.bfloat16  # matmul operand dtype; accumulation is always f32

# Row indices of the packed per-channel parameter slab.
(R_S1, R_T1,
 R_SK1, R_TK1, R_SK2, R_TK2, R_SK3, R_TK3, R_SK4, R_TK4,
 R_S3, R_T3, R_SSE, R_TSE, R_BSE1, R_BSE2) = range(16)
N_BNP_ROWS = 16


# ----------------------------- Pallas kernel -----------------------------

def scbottleneck_kernel(x_ref, w1ab_ref, wk_ref, w3_ref, wse1_ref, wse2_ref,
                        bnp_ref, seg_ref, exp_ref, o_ref):
    M = x_ref.shape[0]                 # B * T rows
    gw2 = w1ab_ref.shape[1]
    gw = gw2 // 2                      # group_width
    planes = w3_ref.shape[1]
    seb = wse1_ref.shape[1]            # SE bottleneck channels
    B = seg_ref.shape[0]
    T = M // B

    x = x_ref[...]                     # (M, Cin) f32
    bnp = bnp_ref[...]                 # packed scales / shifts / biases

    def row(i, w):                     # (1, w) per-channel vector
        return bnp[i:i + 1, :w]

    def mm(a, w):                      # MXU matmul, f32 accumulation
        return jnp.dot(a.astype(MM_DTYPE), w.astype(MM_DTYPE),
                       preferred_element_type=jnp.float32)

    def relu(v):
        return jnp.maximum(v, 0.0)

    def sigmoid(v):                    # exp + reciprocal both run on the EUP
        return pl.reciprocal(1.0 + jnp.exp(-v), approx=True)

    # ---- hoisted row indices / boundary masks (shared by all conv sites) ----
    ridx = lax.broadcasted_iota(jnp.int32, (M, gw), 0)
    tmod = ridx % T                        # time index inside a batch element
    phase = ridx % POOLING_R               # position inside a pooling window
    has_prev = tmod > 0                    # x[t-1] exists
    has_next = tmod < T - 1                # x[t+1] exists
    has_prevg = tmod >= POOLING_R          # pooled step p-1 exists
    has_nextg = tmod < T - POOLING_R       # pooled step p+1 exists
    even_pair = (phase % 2) == 0
    low_half = phase < 2

    def sdn(v, k):                     # v[r - k]
        return pltpu.roll(v, shift=k, axis=0)

    def sup(v, k):                     # v[r + k] (cyclic shift M-k, non-negative)
        return pltpu.roll(v, shift=M - k, axis=0)

    def conv3(v, w_flat, m_prev, m_next, shift):
        # 3-tap Conv1d (stride 1, zero pad) fused into a single matmul.
        vp = jnp.where(m_prev, sdn(v, shift), 0.0)
        vn = jnp.where(m_next, sup(v, shift), 0.0)
        return mm(jnp.concatenate([vp, v, vn], axis=1), w_flat)

    # ---- conv1_a / conv1_b (fused 1x1 conv) + bn + relu ----
    ab = relu(mm(x, w1ab_ref[...]) * row(R_S1, gw2) + row(R_T1, gw2))
    out_a = ab[:, :gw]
    out_b = ab[:, gw:]

    # ---- k1 branch: conv3 + bn, then relu ----
    out_a = relu(conv3(out_a, wk_ref[0], has_prev, has_next, 1)
                 * row(R_SK1, gw) + row(R_TK1, gw))

    # ---- SCConv branch on out_b ----
    # AvgPool1d(4,4) + nearest upsample, done at full resolution: a two-step
    # roll butterfly leaves every row holding its pooling-group average.
    pair = out_b + jnp.where(even_pair, sup(out_b, 1), sdn(out_b, 1))
    quad = pair + jnp.where(low_half, sup(pair, 2), sdn(pair, 2))
    ga = quad * (1.0 / POOLING_R)
    # k2: conv3 over the pooled sequence == conv3 over group averages with
    # +/- one pooling-window shifts; BN; result is already at full resolution.
    k2 = (conv3(ga, wk_ref[1], has_prevg, has_nextg, POOLING_R)
          * row(R_SK2, gw) + row(R_TK2, gw))
    gate = sigmoid(out_b + k2)
    k3 = (conv3(out_b, wk_ref[2], has_prev, has_next, 1)
          * row(R_SK3, gw) + row(R_TK3, gw))
    k4 = (conv3(k3 * gate, wk_ref[3], has_prev, has_next, 1)
          * row(R_SK4, gw) + row(R_TK4, gw))
    out_b = relu(k4)

    # ---- conv3 (1x1 over channel concat) + bn3 ----
    out = mm(jnp.concatenate([out_a, out_b], axis=1), w3_ref[...])
    out = out * row(R_S3, planes) + row(R_T3, planes)

    # ---- SEBlock: per-batch global average -> 1x1 -> relu -> bn -> 1x1 -> sigmoid ----
    z = jnp.dot(seg_ref[...], out, preferred_element_type=jnp.float32)  # (B, planes)
    z = relu(mm(z, wse1_ref[...]) + row(R_BSE1, seb))
    z = z * row(R_SSE, seb) + row(R_TSE, seb)
    z = sigmoid(mm(z, wse2_ref[...]) + row(R_BSE2, planes))
    out = out * jnp.dot(exp_ref[...], z, preferred_element_type=jnp.float32)

    # ---- residual add (downsample=None, inplanes == planes) + relu ----
    o_ref[...] = jnp.maximum(out + x, 0.0)


# ----------------------------- wrapper -----------------------------------

def sc_bottleneck_forward(x_btc, params):
    """x_btc: (B, T, Cin) float32. Returns (B, T, planes) float32."""
    B, T, C = x_btc.shape
    planes = params["w3"].shape[1]
    assert C == planes, "downsample=None residual add needs inplanes == planes"
    assert T % POOLING_R == 0, "AvgPool1d(4,4)+interpolate path assumes T % 4 == 0"

    M = B * T
    x2d = x_btc.reshape(M, C)

    # Per-batch mean / broadcast operators for the SE block (O(B*T) elements,
    # not O(T^2)).
    bid = jnp.arange(M, dtype=jnp.int32) // T
    onehot = (bid[:, None] == jnp.arange(B, dtype=jnp.int32)[None, :]
              ).astype(jnp.float32)                    # (M, B)  broadcast map
    seg_mat = onehot.T * (1.0 / T)                     # (B, M)  mean-over-time

    args = (x2d, params["w1ab"], params["wk"], params["w3"],
            params["wse1"], params["wse2"], params["bnp"], seg_mat, onehot)

    out2d = pl.pallas_call(
        scbottleneck_kernel,
        out_shape=jax.ShapeDtypeStruct((M, planes), jnp.float32),
        in_specs=[pl.BlockSpec(memory_space=pltpu.MemorySpace.VMEM)
                  for _ in args],
        out_specs=pl.BlockSpec(memory_space=pltpu.MemorySpace.VMEM),
    )(*args)
    return out2d.reshape(B, T, planes)


# ----------------------------- params ------------------------------------

def make_params(key, inplanes, planes, bottleneck_width=32, cardinality=1,
                se_bottleneck=128, eps=1e-5):
    gw = int(planes * (bottleneck_width / 64.0)) * cardinality  # group_width
    keys = iter(jax.random.split(key, 64))

    def rnd(shape):
        return 0.1 * jax.random.normal(next(keys), shape, jnp.float32)

    def bn_fold(c):
        gamma = 1.0 + 0.1 * jax.random.normal(next(keys), (c,), jnp.float32)
        beta = 0.1 * jax.random.normal(next(keys), (c,), jnp.float32)
        mean = 0.1 * jax.random.normal(next(keys), (c,), jnp.float32)
        var = 1.0 + 0.1 * jax.random.normal(next(keys), (c,), jnp.float32) ** 2
        scale = gamma * lax.rsqrt(var + eps)
        shift = beta - mean * scale
        return scale, shift

    p = {}
    # conv1_a / conv1_b: torch (cout, cin, 1) stored transposed (cin, cout),
    # fused along the output-channel axis.
    p["w1ab"] = jnp.concatenate([rnd((inplanes, gw)), rnd((inplanes, gw))], axis=1)
    s1a, t1a = bn_fold(gw)
    s1b, t1b = bn_fold(gw)

    # Four 3-tap convs (k1, SCConv.k2/k3/k4): torch (cout, cin, 3) stored as
    # (3, cin, cout), flattened to (3*cin, cout), stacked into one slab.
    wk_list, sk, tk = [], [], []
    for _ in range(4):
        wk_list.append(rnd((3, gw, gw)).reshape(3 * gw, gw))
        s, t = bn_fold(gw)
        sk.append(s)
        tk.append(t)
    p["wk"] = jnp.stack(wk_list, axis=0)                      # (4, 3*gw, gw)

    p["w3"] = rnd((2 * gw, planes))                           # conv3 (1x1 on concat)
    s3, t3 = bn_fold(planes)

    p["wse1"] = rnd((planes, se_bottleneck))
    bse1 = rnd((se_bottleneck,))
    sse, tse = bn_fold(se_bottleneck)
    p["wse2"] = rnd((se_bottleneck, planes))
    bse2 = rnd((planes,))

    # Pack every per-channel vector (folded BN scale/shift + SE biases) into a
    # single (16, PW) slab -> one DMA instead of ~20 tiny ones.
    pw = max(2 * gw, planes, se_bottleneck)
    rows = [jnp.concatenate([s1a, s1b]), jnp.concatenate([t1a, t1b]),
            sk[0], tk[0], sk[1], tk[1], sk[2], tk[2], sk[3], tk[3],
            s3, t3, sse, tse, bse1, bse2]
    assert len(rows) == N_BNP_ROWS
    bnp = jnp.zeros((N_BNP_ROWS, pw), jnp.float32)
    for i, r in enumerate(rows):
        bnp = bnp.at[i, :r.shape[0]].set(r)
    p["bnp"] = bnp
    return p


# ----------------------------- main --------------------------------------

if __name__ == "__main__":
    B, C, T = 2, 16, 32          # PyTorch NCL: inplanes = planes = 16, seq len 32
    inplanes = planes = C        # downsample=None => residual needs equal channels

    key = jax.random.PRNGKey(0)
    k_x, k_p = jax.random.split(key)
    x_nct = jax.random.normal(k_x, (B, C, T), jnp.float32)   # PyTorch layout (B, C, T)

    params = make_params(k_p, inplanes, planes)

    x_btc = jnp.transpose(x_nct, (0, 2, 1))                  # -> (B, T, C)
    out_btc = sc_bottleneck_forward(x_btc, params)
    out_nct = jnp.transpose(out_btc, (0, 2, 1))              # back to (B, planes, T)

    jax.block_until_ready(out_nct)
    assert out_nct.shape == (B, planes, T)
    print("KERNEL_OK")
</pallas_src>

<mosaic_0001>
module attributes {stable_mosaic.version = 11 : i64} {
  func.func @scbottleneck_kernel(%arg0: memref<64x16xf32, #tpu.memory_space<vmem>>, %arg1: memref<16x16xf32, #tpu.memory_space<vmem>>, %arg2: memref<4x24x8xf32, #tpu.memory_space<vmem>>, %arg3: memref<16x16xf32, #tpu.memory_space<vmem>>, %arg4: memref<16x128xf32, #tpu.memory_space<vmem>>, %arg5: memref<128x16xf32, #tpu.memory_space<vmem>>, %arg6: memref<16x128xf32, #tpu.memory_space<vmem>>, %arg7: memref<2x64xf32, #tpu.memory_space<vmem>>, %arg8: memref<64x2xf32, #tpu.memory_space<vmem>>, %arg9: memref<64x16xf32, #tpu.memory_space<vmem>>) attributes {dimension_semantics = [], scalar_prefetch = 0 : i64, scratch_operands = 0 : i64, tpu.core_type = #tpu.core_type<tc>} {
    %c0 = arith.constant 0 : index
    %c0_0 = arith.constant 0 : index
    %0 = vector.load %arg0[%c0, %c0_0] : memref<64x16xf32, #tpu.memory_space<vmem>>, vector<64x16xf32>
    %c0_1 = arith.constant 0 : index
    %c0_2 = arith.constant 0 : index
    %1 = vector.load %arg6[%c0_1, %c0_2] : memref<16x128xf32, #tpu.memory_space<vmem>>, vector<16x128xf32>
    %2 = tpu.iota {dimensions = array<i32: 0>} : vector<64x8xi32>
    %c32_i32 = arith.constant 32 : i32
    %c0_i32 = arith.constant 0 : i32
    %3 = arith.cmpi eq, %c32_i32, %c0_i32 : i32
    %c1_i32 = arith.constant 1 : i32
    %4 = arith.select %3, %c1_i32, %c32_i32 : i32
    %5 = vector.broadcast %4 : i32 to vector<64x8xi32>
    %6 = arith.remsi %2, %5 : vector<64x8xi32>
    %c0_i32_3 = arith.constant 0 : i32
    %7 = vector.broadcast %c0_i32_3 : i32 to vector<64x8xi32>
    %8 = arith.cmpi ne, %6, %7 : vector<64x8xi32>
    %c0_i32_4 = arith.constant 0 : i32
    %9 = vector.broadcast %c0_i32_4 : i32 to vector<64x8xi32>
    %10 = arith.cmpi slt, %6, %9 : vector<64x8xi32>
    %c0_i32_5 = arith.constant 0 : i32
    %11 = arith.cmpi slt, %4, %c0_i32_5 : i32
    %12 = vector.broadcast %11 : i1 to vector<64x8xi1>
    %13 = vector.broadcast %12 : vector<64x8xi1> to vector<64x8xi1>
    %14 = arith.xori %10, %13 : vector<64x8xi1>
    %15 = arith.andi %14, %8 : vector<64x8xi1>
    %16 = vector.broadcast %4 : i32 to vector<64x8xi32>
    %17 = arith.addi %6, %16 : vector<64x8xi32>
    %18 = arith.select %15, %17, %6 : vector<64x8xi1>, vector<64x8xi32>
    %c4_i32 = arith.constant 4 : i32
    %c0_i32_6 = arith.constant 0 : i32
    %19 = arith.cmpi eq, %c4_i32, %c0_i32_6 : i32
    %c1_i32_7 = arith.constant 1 : i32
    %20 = arith.select %19, %c1_i32_7, %c4_i32 : i32
    %21 = vector.broadcast %20 : i32 to vector<64x8xi32>
    %22 = arith.remsi %2, %21 : vector<64x8xi32>
    %c0_i32_8 = arith.constant 0 : i32
    %23 = vector.broadcast %c0_i32_8 : i32 to vector<64x8xi32>
    %24 = arith.cmpi ne, %22, %23 : vector<64x8xi32>
    %c0_i32_9 = arith.constant 0 : i32
    %25 = vector.broadcast %c0_i32_9 : i32 to vector<64x8xi32>
    %26 = arith.cmpi slt, %22, %25 : vector<64x8xi32>
    %c0_i32_10 = arith.constant 0 : i32
    %27 = arith.cmpi slt, %20, %c0_i32_10 : i32
    %28 = vector.broadcast %27 : i1 to vector<64x8xi1>
    %29 = vector.broadcast %28 : vector<64x8xi1> to vector<64x8xi1>
    %30 = arith.xori %26, %29 : vector<64x8xi1>
    %31 = arith.andi %30, %24 : vector<64x8xi1>
    %32 = vector.broadcast %20 : i32 to vector<64x8xi32>
    %33 = arith.addi %22, %32 : vector<64x8xi32>
    %34 = arith.select %31, %33, %22 : vector<64x8xi1>, vector<64x8xi32>
    %c0_i32_11 = arith.constant 0 : i32
    %35 = vector.broadcast %c0_i32_11 : i32 to vector<64x8xi32>
    %36 = arith.cmpi sgt, %18, %35 : vector<64x8xi32>
    %c31_i32 = arith.constant 31 : i32
    %37 = vector.broadcast %c31_i32 : i32 to vector<64x8xi32>
    %38 = arith.cmpi slt, %18, %37 : vector<64x8xi32>
    %c4_i32_12 = arith.constant 4 : i32
    %39 = vector.broadcast %c4_i32_12 : i32 to vector<64x8xi32>
    %40 = arith.cmpi sge, %18, %39 : vector<64x8xi32>
    %c28_i32 = arith.constant 28 : i32
    %41 = vector.broadcast %c28_i32 : i32 to vector<64x8xi32>
    %42 = arith.cmpi slt, %18, %41 : vector<64x8xi32>
    %c2_i32 = arith.constant 2 : i32
    %c0_i32_13 = arith.constant 0 : i32
    %43 = arith.cmpi eq, %c2_i32, %c0_i32_13 : i32
    %c1_i32_14 = arith.constant 1 : i32
    %44 = arith.select %43, %c1_i32_14, %c2_i32 : i32
    %45 = vector.broadcast %44 : i32 to vector<64x8xi32>
    %46 = arith.remsi %34, %45 : vector<64x8xi32>
    %c0_i32_15 = arith.constant 0 : i32
    %47 = vector.broadcast %c0_i32_15 : i32 to vector<64x8xi32>
    %48 = arith.cmpi ne, %46, %47 : vector<64x8xi32>
    %c0_i32_16 = arith.constant 0 : i32
    %49 = vector.broadcast %c0_i32_16 : i32 to vector<64x8xi32>
    %50 = arith.cmpi slt, %46, %49 : vector<64x8xi32>
    %c0_i32_17 = arith.constant 0 : i32
    %51 = arith.cmpi slt, %44, %c0_i32_17 : i32
    %52 = vector.broadcast %51 : i1 to vector<64x8xi1>
    %53 = vector.broadcast %52 : vector<64x8xi1> to vector<64x8xi1>
    %54 = arith.xori %50, %53 : vector<64x8xi1>
    %55 = arith.andi %54, %48 : vector<64x8xi1>
    %56 = vector.broadcast %44 : i32 to vector<64x8xi32>
    %57 = arith.addi %46, %56 : vector<64x8xi32>
    %58 = arith.select %55, %57, %46 : vector<64x8xi1>, vector<64x8xi32>
    %c0_i32_18 = arith.constant 0 : i32
    %59 = vector.broadcast %c0_i32_18 : i32 to vector<64x8xi32>
    %60 = arith.cmpi eq, %58, %59 : vector<64x8xi32>
    %c2_i32_19 = arith.constant 2 : i32
    %61 = vector.broadcast %c2_i32_19 : i32 to vector<64x8xi32>
    %62 = arith.cmpi slt, %34, %61 : vector<64x8xi32>
    %c0_20 = arith.constant 0 : index
    %c0_21 = arith.constant 0 : index
    %63 = vector.load %arg1[%c0_20, %c0_21] : memref<16x16xf32, #tpu.memory_space<vmem>>, vector<16x16xf32>
    %64 = arith.truncf %0 : vector<64x16xf32> to vector<64x16xbf16>
    %65 = arith.truncf %63 : vector<16x16xf32> to vector<16x16xbf16>
    %cst = arith.constant dense<0.000000e+00> : vector<64x16xf32>
    %66 = tpu.matmul %64, %65, %cst {dimension_numbers = #tpu.dot_dimension_numbers<[1], [0], [0], [1], [0, 0, 1, 1], [], []>} : vector<64x16xbf16>, vector<16x16xbf16>, vector<64x16xf32> -> vector<64x16xf32>
    %67 = vector.extract_strided_slice %1 {offsets = [0, 0], sizes = [1, 16], strides = [1, 1]} : vector<16x128xf32> to vector<1x16xf32>
    %68 = vector.broadcast %67 : vector<1x16xf32> to vector<64x16xf32>
    %69 = arith.mulf %66, %68 : vector<64x16xf32>
    %70 = vector.extract_strided_slice %1 {offsets = [1, 0], sizes = [1, 16], strides = [1, 1]} : vector<16x128xf32> to vector<1x16xf32>
    %71 = vector.broadcast %70 : vector<1x16xf32> to vector<64x16xf32>
    %72 = arith.addf %69, %71 : vector<64x16xf32>
    %cst_22 = arith.constant 0.000000e+00 : f32
    %73 = vector.broadcast %cst_22 : f32 to vector<64x16xf32>
    %74 = arith.maximumf %72, %73 : vector<64x16xf32>
    %75 = vector.extract_strided_slice %74 {offsets = [0, 0], sizes = [64, 8], strides = [1, 1]} : vector<64x16xf32> to vector<64x8xf32>
    %76 = vector.extract_strided_slice %74 {offsets = [0, 8], sizes = [64, 8], strides = [1, 1]} : vector<64x16xf32> to vector<64x8xf32>
    %c0_23 = arith.constant 0 : index
    %c0_24 = arith.constant 0 : index
    %c0_25 = arith.constant 0 : index
    %77 = vector.load %arg2[%c0_23, %c0_24, %c0_25] : memref<4x24x8xf32, #tpu.memory_space<vmem>>, vector<1x24x8xf32>
    %78 = vector.shape_cast %77 : vector<1x24x8xf32> to vector<24x8xf32>
    %c1_i32_26 = arith.constant 1 : i32
    %79 = tpu.dynamic_rotate %75 by %c1_i32_26 dim 0 : vector<64x8xf32>, i32 -> vector<64x8xf32>
    %cst_27 = arith.constant 0.000000e+00 : f32
    %80 = vector.broadcast %cst_27 : f32 to vector<64x8xf32>
    %81 = arith.select %36, %79, %80 : vector<64x8xi1>, vector<64x8xf32>
    %c63_i32 = arith.constant 63 : i32
    %82 = tpu.dynamic_rotate %75 by %c63_i32 dim 0 : vector<64x8xf32>, i32 -> vector<64x8xf32>
    %cst_28 = arith.constant 0.000000e+00 : f32
    %83 = vector.broadcast %cst_28 : f32 to vector<64x8xf32>
    %84 = arith.select %38, %82, %83 : vector<64x8xi1>, vector<64x8xf32>
    %85 = tpu.concatenate %81, %75, %84 in 1 : vector<64x8xf32>, vector<64x8xf32>, vector<64x8xf32> -> vector<64x24xf32>
    %86 = arith.truncf %85 : vector<64x24xf32> to vector<64x24xbf16>
    %87 = arith.truncf %78 : vector<24x8xf32> to vector<24x8xbf16>
    %cst_29 = arith.constant dense<0.000000e+00> : vector<64x8xf32>
    %88 = tpu.matmul %86, %87, %cst_29 {dimension_numbers = #tpu.dot_dimension_numbers<[1], [0], [0], [1], [0, 0, 1, 1], [], []>} : vector<64x24xbf16>, vector<24x8xbf16>, vector<64x8xf32> -> vector<64x8xf32>
    %89 = vector.extract_strided_slice %1 {offsets = [2, 0], sizes = [1, 8], strides = [1, 1]} : vector<16x128xf32> to vector<1x8xf32>
    %90 = vector.broadcast %89 : vector<1x8xf32> to vector<64x8xf32>
    %91 = arith.mulf %88, %90 : vector<64x8xf32>
    %92 = vector.extract_strided_slice %1 {offsets = [3, 0], sizes = [1, 8], strides = [1, 1]} : vector<16x128xf32> to vector<1x8xf32>
    %93 = vector.broadcast %92 : vector<1x8xf32> to vector<64x8xf32>
    %94 = arith.addf %91, %93 : vector<64x8xf32>
    %cst_30 = arith.constant 0.000000e+00 : f32
    %95 = vector.broadcast %cst_30 : f32 to vector<64x8xf32>
    %96 = arith.maximumf %94, %95 : vector<64x8xf32>
    %c63_i32_31 = arith.constant 63 : i32
    %97 = tpu.dynamic_rotate %76 by %c63_i32_31 dim 0 : vector<64x8xf32>, i32 -> vector<64x8xf32>
    %c1_i32_32 = arith.constant 1 : i32
    %98 = tpu.dynamic_rotate %76 by %c1_i32_32 dim 0 : vector<64x8xf32>, i32 -> vector<64x8xf32>
    %99 = arith.select %60, %97, %98 : vector<64x8xi1>, vector<64x8xf32>
    %100 = arith.addf %76, %99 : vector<64x8xf32>
    %c62_i32 = arith.constant 62 : i32
    %101 = tpu.dynamic_rotate %100 by %c62_i32 dim 0 : vector<64x8xf32>, i32 -> vector<64x8xf32>
    %c2_i32_33 = arith.constant 2 : i32
    %102 = tpu.dynamic_rotate %100 by %c2_i32_33 dim 0 : vector<64x8xf32>, i32 -> vector<64x8xf32>
    %103 = arith.select %62, %101, %102 : vector<64x8xi1>, vector<64x8xf32>
    %104 = arith.addf %100, %103 : vector<64x8xf32>
    %cst_34 = arith.constant 2.500000e-01 : f32
    %105 = vector.broadcast %cst_34 : f32 to vector<64x8xf32>
    %106 = arith.mulf %104, %105 : vector<64x8xf32>
    %c1 = arith.constant 1 : index
    %c0_35 = arith.constant 0 : index
    %c0_36 = arith.constant 0 : index
    %107 = vector.load %arg2[%c1, %c0_35, %c0_36] : memref<4x24x8xf32, #tpu.memory_space<vmem>>, vector<1x24x8xf32>
    %108 = vector.shape_cast %107 : vector<1x24x8xf32> to vector<24x8xf32>
    %c4_i32_37 = arith.constant 4 : i32
    %109 = tpu.dynamic_rotate %106 by %c4_i32_37 dim 0 : vector<64x8xf32>, i32 -> vector<64x8xf32>
    %cst_38 = arith.constant 0.000000e+00 : f32
    %110 = vector.broadcast %cst_38 : f32 to vector<64x8xf32>
    %111 = arith.select %40, %109, %110 : vector<64x8xi1>, vector<64x8xf32>
    %c60_i32 = arith.constant 60 : i32
    %112 = tpu.dynamic_rotate %106 by %c60_i32 dim 0 : vector<64x8xf32>, i32 -> vector<64x8xf32>
    %cst_39 = arith.constant 0.000000e+00 : f32
    %113 = vector.broadcast %cst_39 : f32 to vector<64x8xf32>
    %114 = arith.select %42, %112, %113 : vector<64x8xi1>, vector<64x8xf32>
    %115 = tpu.concatenate %111, %106, %114 in 1 : vector<64x8xf32>, vector<64x8xf32>, vector<64x8xf32> -> vector<64x24xf32>
    %116 = arith.truncf %115 : vector<64x24xf32> to vector<64x24xbf16>
    %117 = arith.truncf %108 : vector<24x8xf32> to vector<24x8xbf16>
    %cst_40 = arith.constant dense<0.000000e+00> : vector<64x8xf32>
    %118 = tpu.matmul %116, %117, %cst_40 {dimension_numbers = #tpu.dot_dimension_numbers<[1], [0], [0], [1], [0, 0, 1, 1], [], []>} : vector<64x24xbf16>, vector<24x8xbf16>, vector<64x8xf32> -> vector<64x8xf32>
    %119 = vector.extract_strided_slice %1 {offsets = [4, 0], sizes = [1, 8], strides = [1, 1]} : vector<16x128xf32> to vector<1x8xf32>
    %120 = vector.broadcast %119 : vector<1x8xf32> to vector<64x8xf32>
    %121 = arith.mulf %118, %120 : vector<64x8xf32>
    %122 = vector.extract_strided_slice %1 {offsets = [5, 0], sizes = [1, 8], strides = [1, 1]} : vector<16x128xf32> to vector<1x8xf32>
    %123 = vector.broadcast %122 : vector<1x8xf32> to vector<64x8xf32>
    %124 = arith.addf %121, %123 : vector<64x8xf32>
    %125 = arith.addf %76, %124 : vector<64x8xf32>
    %cst_41 = arith.constant 0.000000e+00 : f32
    %126 = vector.broadcast %cst_41 : f32 to vector<64x8xf32>
    %127 = arith.subf %126, %125 : vector<64x8xf32>
    %128 = math.exp %127 : vector<64x8xf32>
    %cst_42 = arith.constant 1.000000e+00 : f32
    %129 = vector.broadcast %cst_42 : f32 to vector<64x8xf32>
    %130 = arith.addf %129, %128 : vector<64x8xf32>
    %131 = tpu.reciprocal %130 {approx = true} : vector<64x8xf32> -> vector<64x8xf32>
    %c2 = arith.constant 2 : index
    %c0_43 = arith.constant 0 : index
    %c0_44 = arith.constant 0 : index
    %132 = vector.load %arg2[%c2, %c0_43, %c0_44] : memref<4x24x8xf32, #tpu.memory_space<vmem>>, vector<1x24x8xf32>
    %133 = vector.shape_cast %132 : vector<1x24x8xf32> to vector<24x8xf32>
    %c1_i32_45 = arith.constant 1 : i32
    %134 = tpu.dynamic_rotate %76 by %c1_i32_45 dim 0 : vector<64x8xf32>, i32 -> vector<64x8xf32>
    %cst_46 = arith.constant 0.000000e+00 : f32
    %135 = vector.broadcast %cst_46 : f32 to vector<64x8xf32>
    %136 = arith.select %36, %134, %135 : vector<64x8xi1>, vector<64x8xf32>
    %c63_i32_47 = arith.constant 63 : i32
    %137 = tpu.dynamic_rotate %76 by %c63_i32_47 dim 0 : vector<64x8xf32>, i32 -> vector<64x8xf32>
    %cst_48 = arith.constant 0.000000e+00 : f32
    %138 = vector.broadcast %cst_48 : f32 to vector<64x8xf32>
    %139 = arith.select %38, %137, %138 : vector<64x8xi1>, vector<64x8xf32>
    %140 = tpu.concatenate %136, %76, %139 in 1 : vector<64x8xf32>, vector<64x8xf32>, vector<64x8xf32> -> vector<64x24xf32>
    %141 = arith.truncf %140 : vector<64x24xf32> to vector<64x24xbf16>
    %142 = arith.truncf %133 : vector<24x8xf32> to vector<24x8xbf16>
    %cst_49 = arith.constant dense<0.000000e+00> : vector<64x8xf32>
    %143 = tpu.matmul %141, %142, %cst_49 {dimension_numbers = #tpu.dot_dimension_numbers<[1], [0], [0], [1], [0, 0, 1, 1], [], []>} : vector<64x24xbf16>, vector<24x8xbf16>, vector<64x8xf32> -> vector<64x8xf32>
    %144 = vector.extract_strided_slice %1 {offsets = [6, 0], sizes = [1, 8], strides = [1, 1]} : vector<16x128xf32> to vector<1x8xf32>
    %145 = vector.broadcast %144 : vector<1x8xf32> to vector<64x8xf32>
    %146 = arith.mulf %143, %145 : vector<64x8xf32>
    %147 = vector.extract_strided_slice %1 {offsets = [7, 0], sizes = [1, 8], strides = [1, 1]} : vector<16x128xf32> to vector<1x8xf32>
    %148 = vector.broadcast %147 : vector<1x8xf32> to vector<64x8xf32>
    %149 = arith.addf %146, %148 : vector<64x8xf32>
    %150 = arith.mulf %149, %131 : vector<64x8xf32>
    %c3 = arith.constant 3 : index
    %c0_50 = arith.constant 0 : index
    %c0_51 = arith.constant 0 : index
    %151 = vector.load %arg2[%c3, %c0_50, %c0_51] : memref<4x24x8xf32, #tpu.memory_space<vmem>>, vector<1x24x8xf32>
    %152 = vector.shape_cast %151 : vector<1x24x8xf32> to vector<24x8xf32>
    %c1_i32_52 = arith.constant 1 : i32
    %153 = tpu.dynamic_rotate %150 by %c1_i32_52 dim 0 : vector<64x8xf32>, i32 -> vector<64x8xf32>
    %cst_53 = arith.constant 0.000000e+00 : f32
    %154 = vector.broadcast %cst_53 : f32 to vector<64x8xf32>
    %155 = arith.select %36, %153, %154 : vector<64x8xi1>, vector<64x8xf32>
    %c63_i32_54 = arith.constant 63 : i32
    %156 = tpu.dynamic_rotate %150 by %c63_i32_54 dim 0 : vector<64x8xf32>, i32 -> vector<64x8xf32>
    %cst_55 = arith.constant 0.000000e+00 : f32
    %157 = vector.broadcast %cst_55 : f32 to vector<64x8xf32>
    %158 = arith.select %38, %156, %157 : vector<64x8xi1>, vector<64x8xf32>
    %159 = tpu.concatenate %155, %150, %158 in 1 : vector<64x8xf32>, vector<64x8xf32>, vector<64x8xf32> -> vector<64x24xf32>
    %160 = arith.truncf %159 : vector<64x24xf32> to vector<64x24xbf16>
    %161 = arith.truncf %152 : vector<24x8xf32> to vector<24x8xbf16>
    %cst_56 = arith.constant dense<0.000000e+00> : vector<64x8xf32>
    %162 = tpu.matmul %160, %161, %cst_56 {dimension_numbers = #tpu.dot_dimension_numbers<[1], [0], [0], [1], [0, 0, 1, 1], [], []>} : vector<64x24xbf16>, vector<24x8xbf16>, vector<64x8xf32> -> vector<64x8xf32>
    %163 = vector.extract_strided_slice %1 {offsets = [8, 0], sizes = [1, 8], strides = [1, 1]} : vector<16x128xf32> to vector<1x8xf32>
    %164 = vector.broadcast %163 : vector<1x8xf32> to vector<64x8xf32>
    %165 = arith.mulf %162, %164 : vector<64x8xf32>
    %166 = vector.extract_strided_slice %1 {offsets = [9, 0], sizes = [1, 8], strides = [1, 1]} : vector<16x128xf32> to vector<1x8xf32>
    %167 = vector.broadcast %166 : vector<1x8xf32> to vector<64x8xf32>
    %168 = arith.addf %165, %167 : vector<64x8xf32>
    %cst_57 = arith.constant 0.000000e+00 : f32
    %169 = vector.broadcast %cst_57 : f32 to vector<64x8xf32>
    %170 = arith.maximumf %168, %169 : vector<64x8xf32>
    %171 = tpu.concatenate %96, %170 in 1 : vector<64x8xf32>, vector<64x8xf32> -> vector<64x16xf32>
    %c0_58 = arith.constant 0 : index
    %c0_59 = arith.constant 0 : index
    %172 = vector.load %arg3[%c0_58, %c0_59] : memref<16x16xf32, #tpu.memory_space<vmem>>, vector<16x16xf32>
    %173 = arith.truncf %171 : vector<64x16xf32> to vector<64x16xbf16>
    %174 = arith.truncf %172 : vector<16x16xf32> to vector<16x16xbf16>
    %cst_60 = arith.constant dense<0.000000e+00> : vector<64x16xf32>
    %175 = tpu.matmul %173, %174, %cst_60 {dimension_numbers = #tpu.dot_dimension_numbers<[1], [0], [0], [1], [0, 0, 1, 1], [], []>} : vector<64x16xbf16>, vector<16x16xbf16>, vector<64x16xf32> -> vector<64x16xf32>
    %176 = vector.extract_strided_slice %1 {offsets = [10, 0], sizes = [1, 16], strides = [1, 1]} : vector<16x128xf32> to vector<1x16xf32>
    %177 = vector.broadcast %176 : vector<1x16xf32> to vector<64x16xf32>
    %178 = arith.mulf %175, %177 : vector<64x16xf32>
    %179 = vector.extract_strided_slice %1 {offsets = [11, 0], sizes = [1, 16], strides = [1, 1]} : vector<16x128xf32> to vector<1x16xf32>
    %180 = vector.broadcast %179 : vector<1x16xf32> to vector<64x16xf32>
    %181 = arith.addf %178, %180 : vector<64x16xf32>
    %c0_61 = arith.constant 0 : index
    %c0_62 = arith.constant 0 : index
    %182 = vector.load %arg7[%c0_61, %c0_62] : memref<2x64xf32, #tpu.memory_space<vmem>>, vector<2x64xf32>
    %cst_63 = arith.constant dense<0.000000e+00> : vector<2x16xf32>
    %183 = tpu.matmul %182, %181, %cst_63 {dimension_numbers = #tpu.dot_dimension_numbers<[1], [0], [0], [1], [0, 0, 1, 1], [], []>} : vector<2x64xf32>, vector<64x16xf32>, vector<2x16xf32> -> vector<2x16xf32>
    %c0_64 = arith.constant 0 : index
    %c0_65 = arith.constant 0 : index
    %184 = vector.load %arg4[%c0_64, %c0_65] : memref<16x128xf32, #tpu.memory_space<vmem>>, vector<16x128xf32>
    %185 = arith.truncf %183 : vector<2x16xf32> to vector<2x16xbf16>
    %186 = arith.truncf %184 : vector<16x128xf32> to vector<16x128xbf16>
    %cst_66 = arith.constant dense<0.000000e+00> : vector<2x128xf32>
    %187 = tpu.matmul %185, %186, %cst_66 {dimension_numbers = #tpu.dot_dimension_numbers<[1], [0], [0], [1], [0, 0, 1, 1], [], []>} : vector<2x16xbf16>, vector<16x128xbf16>, vector<2x128xf32> -> vector<2x128xf32>
    %188 = vector.extract_strided_slice %1 {offsets = [14, 0], sizes = [1, 128], strides = [1, 1]} : vector<16x128xf32> to vector<1x128xf32>
    %189 = vector.broadcast %188 : vector<1x128xf32> to vector<2x128xf32>
    %190 = arith.addf %187, %189 : vector<2x128xf32>
    %cst_67 = arith.constant 0.000000e+00 : f32
    %191 = vector.broadcast %cst_67 : f32 to vector<2x128xf32>
    %192 = arith.maximumf %190, %191 : vector<2x128xf32>
    %193 = vector.extract_strided_slice %1 {offsets = [12, 0], sizes = [1, 128], strides = [1, 1]} : vector<16x128xf32> to vector<1x128xf32>
    %194 = vector.broadcast %193 : vector<1x128xf32> to vector<2x128xf32>
    %195 = arith.mulf %192, %194 : vector<2x128xf32>
    %196 = vector.extract_strided_slice %1 {offsets = [13, 0], sizes = [1, 128], strides = [1, 1]} : vector<16x128xf32> to vector<1x128xf32>
    %197 = vector.broadcast %196 : vector<1x128xf32> to vector<2x128xf32>
    %198 = arith.addf %195, %197 : vector<2x128xf32>
    %c0_68 = arith.constant 0 : index
    %c0_69 = arith.constant 0 : index
    %199 = vector.load %arg5[%c0_68, %c0_69] : memref<128x16xf32, #tpu.memory_space<vmem>>, vector<128x16xf32>
    %200 = arith.truncf %198 : vector<2x128xf32> to vector<2x128xbf16>
    %201 = arith.truncf %199 : vector<128x16xf32> to vector<128x16xbf16>
    %cst_70 = arith.constant dense<0.000000e+00> : vector<2x16xf32>
    %202 = tpu.matmul %200, %201, %cst_70 {dimension_numbers = #tpu.dot_dimension_numbers<[1], [0], [0], [1], [0, 0, 1, 1], [], []>} : vector<2x128xbf16>, vector<128x16xbf16>, vector<2x16xf32> -> vector<2x16xf32>
    %203 = vector.extract_strided_slice %1 {offsets = [15, 0], sizes = [1, 16], strides = [1, 1]} : vector<16x128xf32> to vector<1x16xf32>
    %204 = vector.broadcast %203 : vector<1x16xf32> to vector<2x16xf32>
    %205 = arith.addf %202, %204 : vector<2x16xf32>
    %cst_71 = arith.constant 0.000000e+00 : f32
    %206 = vector.broadcast %cst_71 : f32 to vector<2x16xf32>
    %207 = arith.subf %206, %205 : vector<2x16xf32>
    %208 = math.exp %207 : vector<2x16xf32>
    %cst_72 = arith.constant 1.000000e+00 : f32
    %209 = vector.broadcast %cst_72 : f32 to vector<2x16xf32>
    %210 = arith.addf %209, %208 : vector<2x16xf32>
    %211 = tpu.reciprocal %210 {approx = true} : vector<2x16xf32> -> vector<2x16xf32>
    %c0_73 = arith.constant 0 : index
    %c0_74 = arith.constant 0 : index
    %212 = vector.load %arg8[%c0_73, %c0_74] : memref<64x2xf32, #tpu.memory_space<vmem>>, vector<64x2xf32>
    %cst_75 = arith.constant dense<0.000000e+00> : vector<64x16xf32>
    %213 = tpu.matmul %212, %211, %cst_75 {dimension_numbers = #tpu.dot_dimension_numbers<[1], [0], [0], [1], [0, 0, 1, 1], [], []>} : vector<64x2xf32>, vector<2x16xf32>, vector<64x16xf32> -> vector<64x16xf32>
    %214 = arith.mulf %181, %213 : vector<64x16xf32>
    %215 = arith.addf %214, %0 : vector<64x16xf32>
    %cst_76 = arith.constant 0.000000e+00 : f32
    %216 = vector.broadcast %cst_76 : f32 to vector<64x16xf32>
    %217 = arith.maximumf %215, %216 : vector<64x16xf32>
    %c0_77 = arith.constant 0 : index
    %c0_78 = arith.constant 0 : index
    %218 = vector.load %arg9[%c0_77, %c0_78] : memref<64x16xf32, #tpu.memory_space<vmem>>, vector<64x16xf32>
    tpu.vector_store %arg9[%c0_77, %c0_78], %217 {strides = array<i32>} : memref<64x16xf32, #tpu.memory_space<vmem>>, vector<64x16xf32>,
    return
  }
}

</mosaic_0001>

<bundles_post_ra>
// kernel: tpu_custom_call.1
= control target key start
LH: loop header
LB: loop body
LE: loop exit
PB: predicated region body
PF: predicated region fallthrough
CT: control target
= control target key end

     0   :  { %vm395_vm0 = vcmask 130048   ;;  %v43_v15 = vlaneseq  ;;  %s2740_s30 = smov 120   ;;  %s2741_s10 = smov 8   ;;  %s3898_s1 = inlined_call_operand.vmem [shape: f32[16,16], index: 1, kind: input, shape index: {}]   ;;  %s3899_s0 = inlined_call_operand.vmem [shape: f32[64,16], index: 0, kind: input, shape index: {}]   ;;  %s3900_s6 = inlined_call_operand.vmem [shape: f32[16,128], index: 6, kind: input, shape index: {}]   ;;  %s3901_s2 = inlined_call_operand.vmem [shape: f32[4,24,8], index: 2, kind: input, shape index: {}]   ;;  %s3902_s3 = inlined_call_operand.vmem [shape: f32[16,16], index: 3, kind: input, shape index: {}]   ;;  %s3903_s7 = inlined_call_operand.vmem [shape: f32[2,64], index: 7, kind: input, shape index: {}]   ;;  %s3904_s4 = inlined_call_operand.vmem [shape: f32[16,128], index: 4, kind: input, shape index: {}]   ;;  %s3905_s5 = inlined_call_operand.vmem [shape: f32[128,16], index: 5, kind: input, shape index: {}]   ;;  %s3906_s8 = inlined_call_operand.vmem [shape: f32[64,2], index: 8, kind: input, shape index: {}]   ;;  %s3907_s9 = inlined_call_operand.vmem [shape: f32[64,16], index: 9, kind: output, shape index: {}]  }
   0x1   :  { %v388_v0 = vld [vmem:[%s3898_s1] sm:$0xff]  ;;  %v389_v1 = vld [vmem:[%s3898_s1 + $0x8] sm:$0xff]  ;;  %v35_v5 = vld [vmem:[%s3899_s0 + $0x10] sm:$0xff]  ;;  %s2742_s17 = smov 16  }
   0x2   :  { %v33_v2 = vld [vmem:[%s3899_s0] sm:$0xff]  ;;  %v394_v3 = vpack.c.bf16 %v389_v1, %v388_v0  ;;  %v34_v4 = vld [vmem:[%s3899_s0 + $0x8] sm:$0xff]  ;;  %v36_v6 = vld [vmem:[%s3899_s0 + $0x18] sm:$0xff]  ;;  %v2829_v16 = vshrl.u32 %v43_v15, 7 }
   0x3   :  { %v390_v7 = vpack.c.bf16 %v34_v4, %v33_v2  ;;  %v37_v8 = vld [vmem:[%s3899_s0 + $0x20] sm:$0xff]  ;;  %v38_v9 = vld [vmem:[%s3899_s0 + $0x28] sm:$0xff]  ;;  %v391_v10 = vpack.c.bf16 %v36_v6, %v35_v5  ;;  %v39_v12 = vld [vmem:[%s3899_s0 + $0x30] sm:$0xff] }
   0x4   :  { %2404 = vmatprep.subr.bf16.mxu0 %v394_v3  ;;  %v392_v11 = vpack.c.bf16 %v38_v9, %v37_v8  ;;  %v40_v13 = vld [vmem:[%s3899_s0 + $0x38] sm:$0xff]  ;;  %v3909_v17 = vsub.s32 0, %v2829_v16  ;;  %v41_v18 = vld [vmem:[%s3900_s6] sm:$0xff]  ;;  %v3908_v19 = vsub.s32 1, %v2829_v16  ;;  %v2873_v54 = vadd.s32 16, %v2829_v16 }
   0x5   :  { %2405 = vmatpush3.bf16.msra.mxu0 %v394_v3  ;;  %2406 = vmatprep.mubr.msk.bf16.mxu0 %vm395_vm0, %v390_v7  ;;  %v393_v14 = vpack.c.bf16 %v40_v13, %v39_v12  ;;  %v2876_v55 = vadd.s32 8, %v2829_v16  ;;  %v2881_v59 = vadd.s32 24, %v2829_v16  ;;  %v2884_v60 = vadd.s32 40, %v2829_v16 }
   0x6   :  { %v476_v20 = vrot.slane %v41_v18, %v3909_v17  ;;  %v488_v21 = vrot.slane %v41_v18, %v3908_v19  ;;  %v166_v56 = vand.u32 3, %v2873_v54  ;;  %vm516_vm1 = vcmp.lt.s32.totalorder %v2829_v16, 1 }
   0x7   :  { %v159_v57 = vand.u32 3, %v2876_v55  ;;  %v173_v0 = vand.u32 3, %v2881_v59  ;;  %v187_v2 = vand.u32 3, %v2884_v60  ;;  %vm541_vm3 = vcmp.lt.s32.totalorder %v2829_v16, 7 }
   0x8   :  { %2407 = vmatmul.mubr.msk.bf16.vlgmr.msra.gmra.mxu0 %vm395_vm0, %v391_v10  ;;  %v294_v61 = vand.u32 1, %v166_v56  ;;  %v2902_v8 = vadd.s32 48, %v2829_v16  ;;  %v3911_v18 = vand.u32 31, %v2881_v59  ;;  %vm920_vm13 = vcmp.lt.s32.totalorder %v2829_v16, 2 }
   0x9   :  { %2410 = vmatprep.mubr.msk.bf16.mxu0 %vm395_vm0, %v392_v11  ;;  %v287_v62 = vand.u32 1, %v159_v57  ;;  %v301_v7 = vand.u32 1, %v173_v0  ;;  %v315_v15 = vand.u32 1, %v187_v2  ;;  %vm382_vm14 = vcmp.lt.s32.totalorder %v166_v56, 2 }
   0xa   :  { %vm374_vm2 = vcmp.eq.s32.totalorder %v294_v61, 0  ;;  %vm2947_vm6 = vcmp.lt.s32.totalorder %v3911_v18, 31  ;;  %vm903_vm15 = vcmp.lt.s32.totalorder %v2829_v16, 6 }
   0xb   :  { %vm373_vm4 = vcmp.eq.s32.totalorder %v287_v62, 0  ;;  %vm375_vm5 = vcmp.eq.s32.totalorder %v301_v7, 0  ;;  %vm377_vm7 = vcmp.eq.s32.totalorder %v315_v15, 0 }
  0x10   :  { %2411 = vmatmul.mubr.msk.bf16.gmra.mxu0 %vm395_vm0, %v393_v14 }
  0xc8   :  { %v2408_v22 = vpop.f32.mrf.mxu0 }
  0xc9   :  { %v479_v23 = vmul.f32 %v2408_v22, %v476_v20 }
  0xca   :  { %v442_v24 = vpop.f32.mrf.mxu0 }
  0xcb   :  { %v491_v25 = vadd.f32 %v488_v21, %v479_v23  ;;  %v477_v26 = vmul.f32 %v476_v20, %v442_v24 }
  0xcc   :  { %v2409_v27 = vpop.f32.mrf.mxu0 }
  0xcd   :  { %v2840_v28 = vmax.f32 %v491_v25, 0.0  ;;  %v489_v29 = vadd.f32 %v488_v21, %v477_v26  ;;  %v480_v30 = vmul.f32 %v2409_v27, %v476_v20  ;;  %v152_v27 = vand.u32 3, %v2829_v16 }
  0xce   :  { %v445_v31 = vpop.f32.mrf.mxu0 }
  0xcf   :  { %v2842_v32 = vmax.f32 %v489_v29, 0.0  ;;  %v492_v33 = vadd.f32 %v488_v21, %v480_v30  ;;  %v478_v34 = vmul.f32 %v476_v20, %v445_v31  ;;  %763 = vrot.lane.b32.xlu1 %v2840_v28, %s2740_s30  ;;  %v3912_v29 = vand.u32 3, %v2902_v8 }
  0xd0   :  { %v2412_v35 = vpop.f32.mrf.mxu0  ;;  %v2938_v31 = vadd.s32 32, %v2829_v16 }
  0xd1   :  { %v2846_v36 = vmax.f32 %v492_v33, 0.0  ;;  %v490_v37 = vadd.f32 %v488_v21, %v478_v34  ;;  %759 = vrot.lane.b32.xlu0 %v2842_v32, %s2740_s30  ;;  %v483_v40 = vmul.f32 %v2412_v35, %v476_v20  ;;  %v2943_v34 = vadd.s32 56, %v2829_v16 }
  0xd2   :  { %v458_v38 = vpop.f32.mrf.mxu0 }
  0xd3   :  { %v2850_v39 = vmax.f32 %v490_v37, 0.0  ;;  %v481_v41 = vmul.f32 %v476_v20, %v458_v38  ;;  %765 = vrot.lane.b32.xlu1 %v2846_v36, %s2740_s30  ;;  %v495_v45 = vadd.f32 %v488_v21, %v483_v40  ;;  %v180_v40 = vand.u32 3, %v2938_v31 }
  0xd4   :  { %v2413_v42 = vpop.f32.mrf.mxu0  ;;  %v3910_v61 = vand.u32 31, %v2943_v34 }
  0xd5   :  { %v493_v43 = vadd.f32 %v488_v21, %v481_v41  ;;  %761 = vrot.lane.b32.xlu0 %v2850_v39, %s2740_s30  ;;  %v484_v47 = vmul.f32 %v2413_v42, %v476_v20  ;;  %v2860_v50 = vmax.f32 %v495_v45, 0.0  ;;  %v322_v45 = vand.u32 1, %v3912_v29 }
  0xd6   :  { %v461_v44 = vpop.f32.mrf.mxu0  ;;  %vm3009_vm10 = vcmp.lt.s32.totalorder %v3910_v61, 31 }
  0xd7   :  { %v2856_v46 = vmax.f32 %v493_v43, 0.0  ;;  %v482_v48 = vmul.f32 %v476_v20, %v461_v44  ;;  %v496_v51 = vadd.f32 %v488_v21, %v484_v47  ;;  %v280_v44 = vand.u32 1, %v152_v27 }
  0xd8   :  { %vm378_vm9 = vcmp.eq.s32.totalorder %v322_v45, 0 }
  0xd9   :  { %v494_v49 = vadd.f32 %v488_v21, %v482_v48  ;;  %767 = vrot.lane.b32.xlu0 %v2856_v46, %s2740_s30  ;;  %v2868_v53 = vmax.f32 %v496_v51, 0.0  ;;  %vm372_vm8 = vcmp.eq.s32.totalorder %v280_v44, 0 }
  0xdb   :  { %v2862_v52 = vmax.f32 %v494_v49, 0.0 }
  0xdd   :  { %771 = vrot.lane.b32.xlu0 %v2860_v50, %s2740_s30  ;;  %769 = vrot.lane.b32.xlu1 %v2862_v52, %s2740_s30 }
  0xe1   :  { %773 = vrot.lane.b32.xlu1 %v2868_v53, %s2740_s30 }
 0x141   :  { %v764_v58 = vpop.permute.xlu1 %763 }
 0x142   :  { %v785_v4 = vrot.slane %v764_v58, 1  ;;  %v801_v5 = vrot.slane %v764_v58, 7 }
 0x143   :  { %v2890_v63 = vpop.permute.xlu0 %759 }
 0x144   :  { %v783_v9 = vrot.slane %v2890_v63, 1  ;;  %v799_v10 = vrot.slane %v2890_v63, 7 }
 0x145   :  { %v2893_v1 = vpop.permute.xlu1 %765 }
 0x146   :  { %v786_v3 = vrot.slane %v2893_v1, 1  ;;  %v802_v13 = vrot.slane %v2893_v1, 7 }
 0x147   :  { %v762_v6 = vpop.permute.xlu0 %761 }
 0x148   :  { %v784_v11 = vrot.slane %v762_v6, 1  ;;  %v800_v12 = vrot.slane %v762_v6, 7  ;;  %v795_v14 = vsel %vm541_vm3, %v785_v4, %v786_v3  ;;  %v2957_v38 = vsel %vm516_vm1, %v801_v5, %v802_v13 }
 0x14a   :  { %v2914_v20 = vsel %vm516_vm1, %v800_v12, %v801_v5  ;;  %v2918_v21 = vsel %vm541_vm3, %v784_v11, %v785_v4  ;;  %v2922_v22 = vsel %vm516_vm1, %v799_v10, %v800_v12  ;;  %v2926_v23 = vsel %vm541_vm3, %v783_v9, %v784_v11 }
 0x14b   :  { %v768_v24 = vpop.permute.xlu0 %767  ;;  %v817_v25 = vsel %vm374_vm2, %v795_v14, %v2914_v20  ;;  %v816_v26 = vsel %vm373_vm4, %v2918_v21, %v2922_v22  ;;  %v308_v11 = vand.u32 1, %v180_v40  ;;  %v201_v12 = vand.u32 3, %v2943_v34 }
 0x14c   :  { %v787_v30 = vrot.slane %v768_v24, 1  ;;  %835 = vrot.lane.b32.xlu0 %v817_v25, %s2741_s10  ;;  %833 = vrot.lane.b32.xlu1 %v816_v26, %s2741_s10  ;;  %v803_v48 = vrot.slane %v768_v24, 7  ;;  %vm381_vm2 = vcmp.lt.s32.totalorder %v159_v57, 2  ;;  %vm383_vm4 = vcmp.lt.s32.totalorder %v173_v0, 2 }
 0x14d   :  { %vm376_vm11 = vcmp.eq.s32.totalorder %v308_v11, 0 }
 0x14e   :  { %v794_v37 = vsel %vm541_vm3, %v786_v3, %v787_v30  ;;  %v3025_v45 = vsel %vm516_vm1, %v802_v13, %v803_v48 }
 0x14f   :  { %v772_v41 = vpop.permute.xlu0 %771  ;;  %v770_v42 = vpop.permute.xlu1 %769  ;;  %v818_v43 = vsel %vm375_vm5, %v794_v37, %v2957_v38  ;;  %v1307_v47 = vsel %vm2947_vm6, %v794_v37, 0.0  ;;  %vm380_vm5 = vcmp.lt.s32.totalorder %v152_v27, 2 }
 0x150   :  { %v789_v49 = vrot.slane %v772_v41, 1  ;;  %v788_v51 = vrot.slane %v770_v42, 1  ;;  %v804_v58 = vrot.slane %v770_v42, 7  ;;  %837 = vrot.lane.b32.xlu1 %v818_v43, %s2741_s10  ;;  %v2969_v62 = vpack.i.bf16 %v1307_v47, %v795_v14 }
 0x151   :  { %v805_v63 = vrot.slane %v772_v41, 7  ;;  %v329_v43 = vand.u32 1, %v201_v12 }
 0x152   :  { %v2973_v3 = vsel %vm541_vm3, %v788_v51, %v789_v49  ;;  %v2977_v4 = vsel %vm516_vm1, %v803_v48, %v804_v58  ;;  %v2981_v5 = vsel %vm541_vm3, %v787_v30, %v788_v51 }
 0x153   :  { %v774_v6 = vpop.permute.xlu1 %773  ;;  %v820_v7 = vsel %vm377_vm7, %v2973_v3, %v2977_v4  ;;  %v3000_v30 = vsel %vm516_vm1, %v804_v58, %v805_v63  ;;  %v819_v47 = vsel %vm376_vm11, %v2981_v5, %v3025_v45  ;;  %vm379_vm12 = vcmp.eq.s32.totalorder %v329_v43, 0 }
 0x154   :  { %v790_v14 = vrot.slane %v774_v6, 1  ;;  %v806_v24 = vrot.slane %v774_v6, 7  ;;  %841 = vrot.lane.b32.xlu1 %v820_v7, %s2741_s10  ;;  %vm385_vm7 = vcmp.lt.s32.totalorder %v187_v2, 2 }
 0x156   :  { %v2994_v26 = vsel %vm516_vm1, %v806_v24, %v799_v10  ;;  %v791_v15 = vsel %vm541_vm3, %v789_v49, %v790_v14  ;;  %v798_v37 = vsel %vm541_vm3, %v790_v14, %v783_v9  ;;  %v3032_v49 = vsel %vm516_vm1, %v805_v63, %v806_v24 }
 0x157   :  { %v815_v41 = vsel %vm372_vm8, %v2926_v23, %v2994_v26  ;;  %v821_v42 = vsel %vm378_vm9, %v791_v15, %v3000_v30  ;;  %v1311_v9 = vsel %vm3009_vm10, %v798_v37, 0.0  ;;  %v822_v51 = vsel %vm379_vm12, %v798_v37, %v3032_v49 }
 0x158   :  { %831 = vrot.lane.b32.xlu0 %v815_v41, %s2741_s10  ;;  %843 = vrot.lane.b32.xlu1 %v821_v42, %s2741_s10  ;;  %v3019_v44 = vpack.i.bf16 %v1311_v9, %v791_v15  ;;  %vm384_vm8 = vcmp.lt.s32.totalorder %v180_v40, 2  ;;  %vm387_vm9 = vcmp.lt.s32.totalorder %v201_v12, 2  ;;  %vm658_vm12 = vcmask 1043456  }
 0x15c   :  { %839 = vrot.lane.b32.xlu0 %v819_v47, %s2741_s10 }
 0x160   :  { %845 = vrot.lane.b32.xlu0 %v822_v51, %s2741_s10 }
 0x1be   :  { %v836_v58 = vpop.permute.xlu0 %835  ;;  %v834_v1 = vpop.permute.xlu1 %833 }
 0x1bf   :  { %v3037_v6 = vadd.f32 %v836_v58, %v2840_v28  ;;  %v3040_v13 = vadd.f32 %v834_v1, %v2850_v39 }
 0x1c1   :  { %875 = vrot.lane.b32.xlu0 %v3037_v6, %s2740_s30  ;;  %873 = vrot.lane.b32.xlu1 %v3040_v13, %s2740_s30 }
 0x1c2   :  { %v838_v48 = vpop.permute.xlu1 %837 }
 0x1c3   :  { %v3047_v63 = vadd.f32 %v838_v48, %v2846_v36 }
 0x1c5   :  { %877 = vrot.lane.b32.xlu1 %v3047_v63, %s2740_s30 }
 0x1c6   :  { %v842_v7 = vpop.permute.xlu1 %841 }
 0x1c7   :  { %v3052_v11 = vadd.f32 %v842_v7, %v2862_v52 }
 0x1c9   :  { %881 = vrot.lane.b32.xlu1 %v3052_v11, %s2740_s30 }
 0x1ca   :  { %v832_v14 = vpop.permute.xlu0 %831  ;;  %v844_v24 = vpop.permute.xlu1 %843 }
 0x1cb   :  { %v3057_v15 = vadd.f32 %v832_v14, %v2842_v32  ;;  %v3060_v37 = vadd.f32 %v844_v24, %v2860_v50 }
 0x1cd   :  { %871 = vrot.lane.b32.xlu0 %v3057_v15, %s2740_s30  ;;  %883 = vrot.lane.b32.xlu1 %v3060_v37, %s2740_s30 }
 0x1ce   :  { %v840_v41 = vpop.permute.xlu0 %839 }
 0x1cf   :  { %v3067_v42 = vadd.f32 %v840_v41, %v2856_v46 }
 0x1d1   :  { %879 = vrot.lane.b32.xlu0 %v3067_v42, %s2740_s30 }
 0x1d2   :  { %v846_v43 = vpop.permute.xlu0 %845 }
 0x1d3   :  { %v3072_v9 = vadd.f32 %v846_v43, %v2868_v53 }
 0x1d5   :  { %885 = vrot.lane.b32.xlu0 %v3072_v9, %s2740_s30 }
 0x233   :  { %v876_v47 = vpop.permute.xlu0 %875  ;;  %v874_v51 = vpop.permute.xlu1 %873 }
 0x234   :  { %v914_v58 = vrot.slane %v876_v47, 6  ;;  %v913_v1 = vrot.slane %v874_v51, 6  ;;  %v897_v7 = vrot.slane %v876_v47, 2  ;;  %v896_v17 = vrot.slane %v874_v51, 2 }
 0x236   :  { %v926_v41 = vsel %vm920_vm13, %v913_v1, %v914_v58  ;;  %v909_v56 = vsel %vm903_vm15, %v896_v17, %v897_v7 }
 0x237   :  { %v878_v48 = vpop.permute.xlu1 %877 }
 0x238   :  { %v898_v14 = vrot.slane %v878_v48, 2  ;;  %v915_v54 = vrot.slane %v878_v48, 6 }
 0x23a   :  { %v908_v24 = vsel %vm903_vm15, %v897_v7, %v898_v14  ;;  %v925_v55 = vsel %vm920_vm13, %v914_v58, %v915_v54 }
 0x23b   :  { %v931_v43 = vsel %vm382_vm14, %v908_v24, %v926_v41  ;;  %v882_v19 = vpop.permute.xlu1 %881 }
 0x23c   :  { %949 = vrot.lane.b32.xlu0 %v931_v43, %s2741_s10  ;;  %v917_v57 = vrot.slane %v882_v19, 6 }
 0x23f   :  { %v872_v25 = vpop.permute.xlu0 %871  ;;  %v884_v61 = vpop.permute.xlu1 %883 }
 0x240   :  { %v912_v33 = vrot.slane %v872_v25, 6  ;;  %v895_v51 = vrot.slane %v872_v25, 2  ;;  %v901_v48 = vrot.slane %v884_v61, 2  ;;  %v918_v58 = vrot.slane %v884_v61, 6 }
 0x242   :  { %v927_v47 = vsel %vm920_vm13, %v912_v33, %v913_v1  ;;  %v922_v12 = vsel %vm920_vm13, %v917_v57, %v918_v58 }
 0x243   :  { %v880_v18 = vpop.permute.xlu0 %879  ;;  %v930_v29 = vsel %vm381_vm2, %v909_v56, %v927_v47 }
 0x244   :  { %v899_v24 = vrot.slane %v880_v18, 2  ;;  %v916_v41 = vrot.slane %v880_v18, 6  ;;  %947 = vrot.lane.b32.xlu1 %v930_v29, %s2741_s10  ;;  %v900_v18 = vrot.slane %v882_v19, 2 }
 0x246   :  { %v907_v7 = vsel %vm903_vm15, %v898_v14, %v899_v24  ;;  %v923_v25 = vsel %vm920_vm13, %v916_v41, %v917_v57  ;;  %v910_v14 = vsel %vm903_vm15, %v895_v51, %v896_v17  ;;  %v905_v27 = vsel %vm903_vm15, %v900_v18, %v901_v48 }
 0x247   :  { %v886_v1 = vpop.permute.xlu0 %885  ;;  %v932_v43 = vsel %vm383_vm4, %v907_v7, %v925_v55  ;;  %v934_v2 = vsel %vm385_vm7, %v905_v27, %v923_v25  ;;  %v906_v19 = vsel %vm903_vm15, %v899_v24, %v900_v18  ;;  %v924_v17 = vsel %vm920_vm13, %v915_v54, %v916_v41 }
 0x248   :  { %v902_v29 = vrot.slane %v886_v1, 2  ;;  %v919_v0 = vrot.slane %v886_v1, 6  ;;  %951 = vrot.lane.b32.xlu1 %v932_v43, %s2741_s10  ;;  %v933_v40 = vsel %vm384_vm8, %v906_v19, %v924_v17  ;;  %v3917_v24 = vand.u32 3, %v2902_v8 }
 0x249   :  { %vm622_vm4 = vcmask 64512  }
 0x24a   :  { %v928_v56 = vsel %vm920_vm13, %v919_v0, %v912_v33  ;;  %v911_v33 = vsel %vm903_vm15, %v902_v29, %v895_v51  ;;  %v921_v61 = vsel %vm920_vm13, %v918_v58, %v919_v0  ;;  %vm386_vm11 = vcmp.lt.s32.totalorder %v3917_v24, 2  ;;  %v2305_v24 = vld [vmem:[%s3901_s2 + $0x18] sm:$0xff] }
 0x24b   :  { %v929_v60 = vsel %vm380_vm5, %v910_v14, %v928_v56  ;;  %v936_v47 = vsel %vm387_vm9, %v911_v33, %v921_v61  ;;  %v904_v54 = vsel %vm903_vm15, %v901_v48, %v902_v29  ;;  %vm1029_vm13 = vcmp.lt.s32.totalorder %v2829_v16, 4 }
 0x24c   :  { %945 = vrot.lane.b32.xlu0 %v929_v60, %s2741_s10  ;;  %955 = vrot.lane.b32.xlu1 %v934_v2, %s2741_s10  ;;  %v935_v41 = vsel %vm386_vm11, %v904_v54, %v922_v12  ;;  %v2306_v54 = vld [vmem:[%s3901_s2 + $0x20] sm:$0xff]  ;;  %vm645_vm5 = vcmask 195584  }
 0x250   :  { %953 = vrot.lane.b32.xlu0 %v933_v40, %s2741_s10  ;;  %959 = vrot.lane.b32.xlu1 %v936_v47, %s2741_s10 }
 0x254   :  { %957 = vrot.lane.b32.xlu0 %v935_v41, %s2741_s10  ;;  %v1106_v41 = vpack.c.bf16 %v2306_v54, %v2305_v24 }
 0x2ae   :  { %v950_v55 = vpop.permute.xlu0 %949 }
 0x2af   :  { %v971_v7 = vadd.f32 %v950_v55, %v3037_v6 }
 0x2b1   :  { %v3136_v18 = vmul.f32 0.25, %v971_v7 }
 0x2b6   :  { %v948_v51 = vpop.permute.xlu1 %947 }
 0x2b7   :  { %v970_v8 = vadd.f32 %v948_v51, %v3040_v13 }
 0x2b9   :  { %v3144_v58 = vmul.f32 0.25, %v970_v8 }
 0x2ba   :  { %v952_v1 = vpop.permute.xlu1 %951 }
 0x2bb   :  { %v972_v43 = vadd.f32 %v952_v1, %v3047_v63 }
 0x2bd   :  { %v3139_v0 = vmul.f32 0.25, %v972_v43 }
 0x2be   :  { %v946_v48 = vpop.permute.xlu0 %945  ;;  %v956_v29 = vpop.permute.xlu1 %955 }
 0x2bf   :  { %v2545_v57 = vpack.i.bf16 %v3139_v0, %v3136_v18  ;;  %v969_v25 = vadd.f32 %v946_v48, %v3057_v15  ;;  %v974_v27 = vadd.f32 %v956_v29, %v3052_v11  ;;  %v3918_v29 = vand.u32 31, %v2881_v59 }
 0x2c1   :  { %v3146_v14 = vmul.f32 0.25, %v969_v25  ;;  %2546 = vrot.lane.b32.xlu1 %v2545_v57, %s2740_s30  ;;  %v3158_v17 = vmul.f32 0.25, %v974_v27  ;;  %vm3185_vm14 = vcmp.lt.s32.totalorder %v3918_v29, 28  ;;  %v536_v57 = vrot.slane %v2846_v36, 1 }
 0x2c2   :  { %v954_v6 = vpop.permute.xlu0 %953  ;;  %v960_v56 = vpop.permute.xlu1 %959 }
 0x2c3   :  { %v2540_v63 = vpack.i.bf16 %v3144_v58, %v3146_v14  ;;  %v973_v13 = vadd.f32 %v954_v6, %v3067_v42  ;;  %v976_v15 = vadd.f32 %v960_v56, %v3072_v9 }
 0x2c5   :  { %2541 = vrot.lane.b32.xlu0 %v2540_v63, %s2740_s30  ;;  %v3154_v2 = vmul.f32 0.25, %v973_v13  ;;  %v3164_v42 = vmul.f32 0.25, %v976_v15 }
 0x2c6   :  { %v958_v60 = vpop.permute.xlu0 %957 }
 0x2c7   :  { %v975_v19 = vadd.f32 %v958_v60, %v3060_v37  ;;  %v2307_v37 = vld [vmem:[%s3901_s2 + $0x28] sm:$0xff] }
 0x2c8   :  { %v1107_v9 = vpack.c.bf16 %v2307_v37, %v2307_v37 }
 0x2c9   :  { %v3160_v33 = vmul.f32 0.25, %v975_v19  ;;  %1005 = vrot.lane.b32.xlu0 %v3154_v2, %s2740_s30  ;;  %v3921_v19 = vand.u32 31, %v2943_v34 }
 0x2ca   :  { %2532 = vmatprep.subr.msk.bf16.mxu0 %vm658_vm12, %v1107_v9  ;;  %v1121_v61 = vsel %vm658_vm12, %v1107_v9, 0 }
 0x2cb   :  { %v2550_v11 = vpack.i.bf16 %v3160_v33, %v3158_v17  ;;  %2427 = vmatpush3.bf16.msra.mxu0 %v1121_v61  ;;  %vm3209_vm15 = vcmp.lt.s32.totalorder %v3921_v19, 28  ;;  %v535_v19 = vrot.slane %v2840_v28, 1 }
 0x2cc   :  { %2428 = vmatprep.subr.bf16.mxu0 %v1106_v41 }
 0x2cd   :  { %2551 = vrot.lane.b32.xlu1 %v2550_v11, %s2740_s30  ;;  %1011 = vrot.lane.b32.xlu0 %v3164_v42, %s2740_s30  ;;  %v2575_v11 = vpack.i.bf16 %v2850_v39, %v2842_v32 }
 0x2cf   :  { %2429 = vmatpush3.bf16.msra.mxu0 %v1106_v41 }
 0x333   :  { %v2547_v40 = vpop.permute.xlu1 %2546 }
 0x334   :  { %v2548_v47 = vunpack.i.l.bf16 %v2547_v40  ;;  %v2549_v55 = vunpack.i.h.bf16 %v2547_v40 }
 0x336   :  { %v1023_v1 = vrot.slane %v2548_v47, 4  ;;  %v1024_v25 = vrot.slane %v2549_v55, 4  ;;  %v507_v47 = vld [vmem:[%s3901_s2 + $0x10] sm:$0xff] }
 0x337   :  { %v2542_v12 = vpop.permute.xlu0 %2541  ;;  %v644_v54 = vpack.c.bf16 %v507_v47, %v507_v47 }
 0x338   :  { %v2544_v51 = vunpack.i.h.bf16 %v2542_v12  ;;  %v2543_v7 = vunpack.i.l.bf16 %v2542_v12  ;;  %v3215_v40 = vsel %vm1029_vm13, %v1023_v1, %v1024_v25 }
 0x339   :  { %2531 = vmatprep.subr.msk.bf16.mxu1 %vm658_vm12, %v644_v54 }
 0x33a   :  { %v1022_v43 = vrot.slane %v2544_v51, 4  ;;  %v1021_v8 = vrot.slane %v2543_v7, 4  ;;  %v537_v51 = vrot.slane %v2856_v46, 1  ;;  %v660_v7 = vsel %vm658_vm12, %v644_v54, 0 }
 0x33b   :  { %v1006_v48 = vpop.permute.xlu0 %1005  ;;  %2415 = vmatpush3.bf16.msra.mxu1 %v660_v7  ;;  %v546_v54 = vsel %vm541_vm3, %v535_v19, %v536_v57  ;;  %v539_v7 = vrot.slane %v2860_v50, 1 }
 0x33c   :  { %v1025_v6 = vrot.slane %v1006_v48, 4  ;;  %v3191_v63 = vsel %vm1029_vm13, %v1022_v43, %v1023_v1  ;;  %v3195_v13 = vsel %vm1029_vm13, %v1021_v8, %v1022_v43 }
 0x33d   :  { %v2555_v56 = vpack.i.bf16 %v3191_v63, %v3195_v13 }
 0x33e   :  { %v3201_v59 = vsel %vm1029_vm13, %v1024_v25, %v1025_v6  ;;  %v505_v25 = vld [vmem:[%s3901_s2] sm:$0xff] }
 0x33f   :  { %v1012_v27 = vpop.permute.xlu0 %1011  ;;  %v2552_v60 = vpop.permute.xlu1 %2551  ;;  %2556 = vrot.lane.b32.xlu1 %v2555_v56, %s2742_s17  ;;  %v1049_v15 = vsel %vm3185_vm14, %v3201_v59, 0.0  ;;  %v534_v56 = vrot.slane %v2850_v39, 1 }
 0x340   :  { %v1028_v37 = vrot.slane %v1012_v27, 4  ;;  %v2554_v9 = vunpack.i.h.bf16 %v2552_v60  ;;  %v2553_v61 = vunpack.i.l.bf16 %v2552_v60  ;;  %v2560_v24 = vpack.i.bf16 %v1049_v15, %v3215_v40 }
 0x341   :  { %v545_v60 = vsel %vm541_vm3, %v536_v57, %v537_v51  ;;  %v533_v15 = vrot.slane %v2842_v32, 1 }
 0x342   :  { %v3223_v34 = vsel %vm1029_vm13, %v1028_v37, %v1021_v8  ;;  %v1027_v12 = vrot.slane %v2554_v9, 4  ;;  %v1026_v41 = vrot.slane %v2553_v61, 4  ;;  %2561 = vrot.lane.b32.xlu0 %v2560_v24, %s2742_s17  ;;  %v547_v9 = vsel %vm541_vm3, %v534_v56, %v535_v19 }
 0x343   :  { %v1053_v55 = vsel %vm3209_vm15, %v3223_v34, 0.0  ;;  %v548_v61 = vsel %vm541_vm3, %v533_v15, %v534_v56  ;;  %v553_v47 = vsel %vm2947_vm6, %v545_v60, 0.0  ;;  %v540_v24 = vrot.slane %v2868_v53, 1 }
 0x344   :  { %v3234_v1 = vsel %vm1029_vm13, %v1026_v41, %v1027_v12  ;;  %v3238_v43 = vsel %vm1029_vm13, %v1025_v6, %v1026_v41  ;;  %v3242_v8 = vsel %vm1029_vm13, %v1027_v12, %v1028_v37  ;;  %v506_v6 = vld [vmem:[%s3901_s2 + $0x8] sm:$0xff]  ;;  %v2580_v37 = vpack.i.bf16 %v2846_v36, %v2840_v28 }
 0x345   :  { %v2565_v48 = vpack.i.bf16 %v3234_v1, %v3238_v43  ;;  %v2570_v29 = vpack.i.bf16 %v1053_v55, %v3242_v8  ;;  %v643_v27 = vpack.c.bf16 %v506_v6, %v505_v25  ;;  %v2585_v12 = vpack.i.bf16 %v547_v9, %v548_v61  ;;  %v2314_v6 = vld [vmem:[%s3901_s2 + $0x40] sm:$0xff] }
 0x346   :  { %v2590_v41 = vpack.i.bf16 %v553_v47, %v546_v54  ;;  %v538_v55 = vrot.slane %v2862_v52, 1  ;;  %v2600_v25 = vpack.i.bf16 %v2868_v53, %v2860_v50  ;;  %v542_v57 = vsel %vm541_vm3, %v539_v7, %v540_v24 }
 0x347   :  { %2566 = vrot.lane.b32.xlu1 %v2565_v48, %s2742_s17  ;;  %2571 = vrot.lane.b32.xlu0 %v2570_v29, %s2742_s17  ;;  %v549_v48 = vsel %vm541_vm3, %v540_v24, %v533_v15  ;;  %v2595_v29 = vpack.i.bf16 %v2862_v52, %v2856_v46  ;;  %v3297_v15 = vpack.c.bf16 %v2314_v6, %v2314_v6  ;;  %v56_v9 = vand.u32 31, %v2829_v16 }
 0x348   :  { %2416 = vmatprep.subr.bf16.mxu1 %v643_v27  ;;  %v557_v56 = vsel %vm3009_vm10, %v549_v48, 0.0  ;;  %v544_v60 = vsel %vm541_vm3, %v537_v51, %v538_v55  ;;  %v3924_v51 = vpack.i.bf16 %v2918_v21, %v2926_v23  ;;  %v84_v21 = vand.u32 31, %v2938_v31 }
 0x349   :  { %2417 = vmatpush3.bf16.msra.mxu1 %v643_v27  ;;  %v543_v27 = vsel %vm541_vm3, %v538_v55, %v539_v7  ;;  %v2610_v19 = vpack.i.bf16 %v557_v56, %v542_v57  ;;  %vm260_vm2 = vcmp.ge.s32.totalorder %v56_v9, 4  ;;  %v515_v57 = vrot.slane %v2868_v53, 7 }
 0x34a   :  { %2533 = vmatprep.subr.msk.bf16.mxu1 %vm658_vm12, %v3297_v15  ;;  %v1038_v61 = vsel %vm260_vm2, %v3223_v34, 0.0  ;;  %vm3327_vm7 = vcmp.ge.s32.totalorder %v84_v21, 4  ;;  %vm3363_vm8 = vcmp.gt.s32.totalorder %v56_v9, 0  ;;  %vm3373_vm9 = vcmp.gt.s32.totalorder %v84_v21, 0 }
 0x34b   :  { %2576 = vrot.lane.b32.xlu1 %v2575_v11, %s2741_s10  ;;  %2581 = vrot.lane.b32.xlu0 %v2580_v37, %s2741_s10  ;;  %v2605_v11 = vpack.i.bf16 %v543_v27, %v544_v60  ;;  %v3925_v37 = vpack.i.bf16 %v2973_v3, %v2981_v5  ;;  %v1086_v23 = vsel %vm622_vm4, %v1038_v61, %v3146_v14  ;;  %v509_v61 = vrot.slane %v2850_v39, 7 }
 0x34c   :  { %v1088_v14 = vsel %vm622_vm4, %v3191_v63, %v3136_v18  ;;  %v508_v18 = vrot.slane %v2842_v32, 7  ;;  %v1092_v27 = vsel %vm622_vm4, %v3234_v1, %v3160_v33  ;;  %v1093_v60 = vsel %vm622_vm4, %v3242_v8, %v3164_v42 }
 0x34d   :  { %v511_v33 = vrot.slane %v2846_v36, 7  ;;  %v510_v8 = vrot.slane %v2840_v28, 7  ;;  %v512_v9 = vrot.slane %v2856_v46, 7 }
 0x34f   :  { %2586 = vrot.lane.b32.xlu1 %v2585_v12, %s2742_s17  ;;  %2591 = vrot.lane.b32.xlu0 %v2590_v41, %s2742_s17  ;;  %v522_v34 = vsel %vm516_vm1, %v509_v61, %v510_v8 }
 0x353   :  { %2596 = vrot.lane.b32.xlu1 %v2595_v29, %s2741_s10  ;;  %2601 = vrot.lane.b32.xlu0 %v2600_v25, %s2741_s10 }
 0x357   :  { %2611 = vrot.lane.b32.xlu0 %v2610_v19, %s2742_s17  ;;  %2606 = vrot.lane.b32.xlu1 %v2605_v11, %s2742_s17 }
 0x35b   :  { %2621 = vrot.lane.b32.xlu0 %v2969_v62, %s2742_s17  ;;  %2616 = vrot.lane.b32.xlu1 %v3924_v51, %s2742_s17 }
 0x35f   :  { %2631 = vrot.lane.b32.xlu0 %v3019_v44, %s2742_s17  ;;  %2626 = vrot.lane.b32.xlu1 %v3925_v37, %s2742_s17  ;;  %v1087_v44 = vsel %vm622_vm4, %v3195_v13, %v3144_v58  ;;  %v1089_v58 = vsel %vm622_vm4, %v3215_v40, %v3139_v0  ;;  %v1042_v13 = vsel %vm3327_vm7, %v3201_v59, 0.0  ;;  %v1091_v59 = vsel %vm622_vm4, %v3238_v43, %v3158_v17 }
 0x360   :  { %v1090_v56 = vsel %vm622_vm4, %v1042_v13, %v3154_v2 }
 0x3b1   :  { %v2557_v47 = vpop.permute.xlu1 %2556 }
 0x3b2   :  { %v2559_v62 = vunpack.i.h.bf16 %v2557_v47  ;;  %v2558_v24 = vunpack.i.l.bf16 %v2557_v47  ;;  %v524_v47 = vsel %vm516_vm1, %v515_v57, %v508_v18 }
 0x3b4   :  { %v1095_v3 = vsel %vm395_vm0, %v1087_v44, %v2559_v62  ;;  %v1094_v5 = vsel %vm395_vm0, %v1086_v23, %v2558_v24  ;;  %v2562_v12 = vpop.permute.xlu0 %2561 }
 0x3b5   :  { %v1102_v54 = vpack.c.bf16 %v1095_v3, %v1094_v5  ;;  %v2564_v41 = vunpack.i.h.bf16 %v2562_v12  ;;  %v2563_v31 = vunpack.i.l.bf16 %v2562_v12  ;;  %v521_v5 = vsel %vm516_vm1, %v510_v8, %v511_v33 }
 0x3b6   :  { %v1296_v8 = vsel %vm3363_vm8, %v2994_v26, 0.0 }
 0x3b7   :  { %2430 = vmatprep.mubr.msk.bf16.mxu0 %vm645_vm5, %v1102_v54  ;;  %v1096_v55 = vsel %vm395_vm0, %v1088_v14, %v2563_v31  ;;  %v1097_v7 = vsel %vm395_vm0, %v1089_v58, %v2564_v41  ;;  %v523_v41 = vsel %vm516_vm1, %v508_v18, %v509_v61  ;;  %v525_v31 = vsel %vm3363_vm8, %v524_v47, 0.0  ;;  %v2313_v18 = vld [vmem:[%s3901_s2 + $0x38] sm:$0xff] }
 0x3b8   :  { %v1103_v48 = vpack.c.bf16 %v1097_v7, %v1096_v55 }
 0x3b9   :  { %v2567_v29 = vpop.permute.xlu1 %2566  ;;  %v2572_v25 = vpop.permute.xlu0 %2571 }
 0x3ba   :  { %v2569_v63 = vunpack.i.h.bf16 %v2567_v29  ;;  %v2568_v6 = vunpack.i.l.bf16 %v2567_v29  ;;  %v2574_v0 = vunpack.i.h.bf16 %v2572_v25  ;;  %v2573_v40 = vunpack.i.l.bf16 %v2572_v25  ;;  %2431 = vmatmul.mubr.msk.bf16.vlgmr.msra.gmra.mxu0 %vm645_vm5, %v1103_v48  ;;  %v2312_v25 = vld [vmem:[%s3901_s2 + $0x30] sm:$0xff] }
 0x3bc   :  { %v1099_v19 = vsel %vm395_vm0, %v1091_v59, %v2569_v63  ;;  %v1098_v11 = vsel %vm395_vm0, %v1090_v56, %v2568_v6  ;;  %v1101_v2 = vsel %vm395_vm0, %v1093_v60, %v2574_v0  ;;  %v1100_v51 = vsel %vm395_vm0, %v1092_v27, %v2573_v40 }
 0x3bd   :  { %v1104_v37 = vpack.c.bf16 %v1099_v19, %v1098_v11  ;;  %v1105_v17 = vpack.c.bf16 %v1101_v2, %v1100_v51  ;;  %v2577_v43 = vpop.permute.xlu1 %2576  ;;  %v2582_v1 = vpop.permute.xlu0 %2581  ;;  %v520_v59 = vsel %vm516_vm1, %v511_v33, %v512_v9  ;;  %v513_v60 = vrot.slane %v2862_v52, 7 }
 0x3be   :  { %v2579_v62 = vunpack.i.h.bf16 %v2577_v43  ;;  %v2578_v24 = vunpack.i.l.bf16 %v2577_v43  ;;  %v2584_v23 = vunpack.i.h.bf16 %v2582_v1  ;;  %v2583_v44 = vunpack.i.l.bf16 %v2582_v1 }
 0x3bf   :  { %2434 = vmatprep.mubr.msk.bf16.mxu0 %vm645_vm5, %v1104_v37  ;;  %v514_v2 = vrot.slane %v2860_v50, 7  ;;  %v1379_v51 = vsel %vm658_vm12, %v3297_v15, 0  ;;  %v1364_v37 = vpack.c.bf16 %v2313_v18, %v2312_v25  ;;  %v529_v33 = vsel %vm3373_vm9, %v520_v59, 0.0 }
 0x3c0   :  { %v626_v55 = vsel %vm622_vm4, %v521_v5, %v2584_v23  ;;  %v625_v7 = vsel %vm622_vm4, %v522_v34, %v2583_v44  ;;  %v623_v48 = vsel %vm622_vm4, %v525_v31, %v2578_v24  ;;  %v624_v29 = vsel %vm622_vm4, %v523_v41, %v2579_v62 }
 0x3c1   :  { %v2587_v54 = vpop.permute.xlu1 %2586  ;;  %v2592_v12 = vpop.permute.xlu0 %2591  ;;  %v519_v47 = vsel %vm516_vm1, %v512_v9, %v513_v60  ;;  %v517_v15 = vsel %vm516_vm1, %v514_v2, %v515_v57  ;;  %v518_v62 = vsel %vm516_vm1, %v513_v60, %v514_v2 }
 0x3c2   :  { %v2589_v21 = vunpack.i.h.bf16 %v2587_v54  ;;  %v2588_v14 = vunpack.i.l.bf16 %v2587_v54  ;;  %v2594_v58 = vunpack.i.h.bf16 %v2592_v12  ;;  %v2593_v13 = vunpack.i.l.bf16 %v2592_v12  ;;  %2435 = vmatmul.mubr.msk.bf16.gmra.mxu0 %vm645_vm5, %v1105_v17 }
 0x3c4   :  { %v633_v63 = vsel %vm395_vm0, %v625_v7, %v2593_v13  ;;  %v634_v6 = vsel %vm395_vm0, %v626_v55, %v2594_v58  ;;  %v631_v0 = vsel %vm395_vm0, %v623_v48, %v2588_v14  ;;  %v632_v40 = vsel %vm395_vm0, %v624_v29, %v2589_v21 }
 0x3c5   :  { %v640_v56 = vpack.c.bf16 %v634_v6, %v633_v63  ;;  %v2597_v27 = vpop.permute.xlu1 %2596  ;;  %v2602_v19 = vpop.permute.xlu0 %2601  ;;  %v639_v11 = vpack.c.bf16 %v632_v40, %v631_v0  ;;  %v1347_v58 = vsel %vm622_vm4, %v2957_v38, %v2846_v36  ;;  %v1346_v6 = vsel %vm622_vm4, %v2914_v20, %v2840_v28 }
 0x3c6   :  { %v2599_v17 = vunpack.i.h.bf16 %v2597_v27  ;;  %v2598_v43 = vunpack.i.l.bf16 %v2597_v27  ;;  %v2604_v61 = vunpack.i.h.bf16 %v2602_v19  ;;  %v2603_v1 = vunpack.i.l.bf16 %v2602_v19 }
 0x3c7   :  { %2418 = vmatprep.mubr.msk.bf16.mxu1 %vm645_vm5, %v639_v11  ;;  %v1345_v0 = vsel %vm622_vm4, %v2922_v22, %v2850_v39  ;;  %v1344_v38 = vsel %vm622_vm4, %v1296_v8, %v2842_v32  ;;  %v1300_v40 = vsel %vm3373_vm9, %v3025_v45, 0.0 }
 0x3c8   :  { %2419 = vmatmul.mubr.msk.bf16.vlgmr.msra.gmra.mxu1 %vm645_vm5, %v640_v56  ;;  %v627_v26 = vsel %vm622_vm4, %v529_v33, %v2598_v43  ;;  %v628_v9 = vsel %vm622_vm4, %v519_v47, %v2599_v17  ;;  %v630_v12 = vsel %vm622_vm4, %v517_v15, %v2604_v61  ;;  %v629_v41 = vsel %vm622_vm4, %v518_v62, %v2603_v1 }
 0x3c9   :  { %v2612_v24 = vpop.permute.xlu0 %2611  ;;  %v2607_v23 = vpop.permute.xlu1 %2606  ;;  %2439 = vmatpush3.bf16.msra.mxu1 %v1379_v51  ;;  %v1349_v17 = vsel %vm622_vm4, %v2977_v4, %v2862_v52  ;;  %v1350_v43 = vsel %vm622_vm4, %v3000_v30, %v2860_v50  ;;  %v1348_v61 = vsel %vm622_vm4, %v1300_v40, %v2856_v46  ;;  %v1351_v1 = vsel %vm622_vm4, %v3032_v49, %v2868_v53 }
 0x3ca   :  { %v2614_v44 = vunpack.i.h.bf16 %v2612_v24  ;;  %v2613_v5 = vunpack.i.l.bf16 %v2612_v24  ;;  %v2609_v34 = vunpack.i.h.bf16 %v2607_v23  ;;  %v2608_v54 = vunpack.i.l.bf16 %v2607_v23  ;;  %2440 = vmatprep.subr.bf16.mxu1 %v1364_v37  ;;  %v3474_v24 = vld [vmem:[%s3900_s6] sm:$0xff] }
 0x3cb   :  { %v1190_v30 = vsub.s32 4, %v2829_v16  ;;  %v1202_v49 = vsub.s32 5, %v2829_v16 }
 0x3cc   :  { %v637_v57 = vsel %vm395_vm0, %v629_v41, %v2613_v5  ;;  %v638_v31 = vsel %vm395_vm0, %v630_v12, %v2614_v44  ;;  %v635_v21 = vsel %vm395_vm0, %v627_v26, %v2608_v54  ;;  %v636_v14 = vsel %vm395_vm0, %v628_v9, %v2609_v34 }
 0x3cd   :  { %v642_v13 = vpack.c.bf16 %v638_v31, %v637_v57  ;;  %v641_v55 = vpack.c.bf16 %v636_v14, %v635_v21  ;;  %v2622_v7 = vpop.permute.xlu0 %2621  ;;  %v2617_v48 = vpop.permute.xlu1 %2616  ;;  %2441 = vmatpush3.bf16.msra.mxu1 %v1364_v37  ;;  %v1191_v23 = vrot.slane %v3474_v24, %v1190_v30  ;;  %v1203_v44 = vrot.slane %v3474_v24, %v1202_v49 }
 0x3ce   :  { %v2624_v29 = vunpack.i.h.bf16 %v2622_v7  ;;  %v2623_v25 = vunpack.i.l.bf16 %v2622_v7  ;;  %v2619_v18 = vunpack.i.h.bf16 %v2617_v48  ;;  %v2618_v63 = vunpack.i.l.bf16 %v2617_v48 }
 0x3cf   :  { %2422 = vmatprep.mubr.msk.bf16.mxu1 %vm645_vm5, %v641_v55 }
 0x3d0   :  { %v1355_v56 = vsel %vm395_vm0, %v1347_v58, %v2624_v29  ;;  %v1354_v59 = vsel %vm395_vm0, %v1346_v6, %v2623_v25  ;;  %v1353_v27 = vsel %vm395_vm0, %v1345_v0, %v2619_v18  ;;  %v1352_v20 = vsel %vm395_vm0, %v1344_v38, %v2618_v63  ;;  %2423 = vmatmul.mubr.msk.bf16.gmra.mxu1 %vm645_vm5, %v642_v13 }
 0x3d1   :  { %v1361_v22 = vpack.c.bf16 %v1355_v56, %v1354_v59  ;;  %v1360_v60 = vpack.c.bf16 %v1353_v27, %v1352_v20  ;;  %v2632_v19 = vpop.permute.xlu0 %2631  ;;  %v2627_v11 = vpop.permute.xlu1 %2626 }
 0x3d2   :  { %v2634_v2 = vunpack.i.h.bf16 %v2632_v19  ;;  %v2633_v51 = vunpack.i.l.bf16 %v2632_v19  ;;  %v2629_v37 = vunpack.i.h.bf16 %v2627_v11  ;;  %v2628_v45 = vunpack.i.l.bf16 %v2627_v11 }
 0x3d3   :  { %2442 = vmatprep.mubr.msk.bf16.mxu1 %vm645_vm5, %v1360_v60 }
 0x3d4   :  { %v1359_v33 = vsel %vm395_vm0, %v1351_v1, %v2634_v2  ;;  %v1358_v8 = vsel %vm395_vm0, %v1350_v43, %v2633_v51  ;;  %v1357_v47 = vsel %vm395_vm0, %v1349_v17, %v2629_v37  ;;  %v1356_v4 = vsel %vm395_vm0, %v1348_v61, %v2628_v45 }
 0x3d5   :  { %v1363_v15 = vpack.c.bf16 %v1359_v33, %v1358_v8  ;;  %v1362_v62 = vpack.c.bf16 %v1357_v47, %v1356_v4 }
 0x3d8   :  { %2443 = vmatmul.mubr.msk.bf16.vlgmr.msra.gmra.mxu1 %vm645_vm5, %v1361_v22 }
 0x3d9   :  { %2446 = vmatprep.mubr.msk.bf16.mxu1 %vm645_vm5, %v1362_v62 }
 0x3e0   :  { %2447 = vmatmul.mubr.msk.bf16.gmra.mxu1 %vm645_vm5, %v1363_v15 }
 0x47a   :  { %v2432_v5 = vpop.f32.mrf.mxu0 }
 0x47b   :  { %v1194_v34 = vmul.f32 %v2432_v5, %v1191_v23 }
 0x47c   :  { %v1157_v54 = vpop.f32.mrf.mxu0 }
 0x47d   :  { %v1206_v26 = vadd.f32 %v1203_v44, %v1194_v34  ;;  %v1192_v9 = vmul.f32 %v1191_v23, %v1157_v54 }
 0x47e   :  { %v2433_v12 = vpop.f32.mrf.mxu0 }
 0x47f   :  { %v1195_v41 = vmul.f32 %v2433_v12, %v1191_v23  ;;  %1224 = vrot.lane.b32.xlu1 %v1206_v26, %s2741_s10  ;;  %v1204_v31 = vadd.f32 %v1203_v44, %v1192_v9 }
 0x480   :  { %v1160_v57 = vpop.f32.mrf.mxu0 }
 0x481   :  { %v1207_v21 = vadd.f32 %v1203_v44, %v1195_v41  ;;  %v1193_v14 = vmul.f32 %v1191_v23, %v1160_v57 }
 0x482   :  { %v2436_v58 = vpop.f32.mrf.mxu0 }
 0x483   :  { %1226 = vrot.lane.b32.xlu0 %v1207_v21, %s2741_s10  ;;  %1220 = vrot.lane.b32.xlu1 %v1204_v31, %s2741_s10  ;;  %v1205_v55 = vadd.f32 %v1203_v44, %v1193_v14  ;;  %v1198_v29 = vmul.f32 %v2436_v58, %v1191_v23 }
 0x484   :  { %v1173_v13 = vpop.f32.mrf.mxu0 }
 0x485   :  { %v1196_v7 = vmul.f32 %v1191_v23, %v1173_v13  ;;  %v1210_v6 = vadd.f32 %v1203_v44, %v1198_v29 }
 0x486   :  { %v2437_v48 = vpop.f32.mrf.mxu0 }
 0x487   :  { %v1208_v25 = vadd.f32 %v1203_v44, %v1196_v7  ;;  %1222 = vrot.lane.b32.xlu0 %v1205_v55, %s2741_s10  ;;  %v1199_v0 = vmul.f32 %v2437_v48, %v1191_v23 }
 0x488   :  { %v1176_v18 = vpop.f32.mrf.mxu0 }
 0x489   :  { %v1197_v63 = vmul.f32 %v1191_v23, %v1176_v18  ;;  %1228 = vrot.lane.b32.xlu1 %v1208_v25, %s2741_s10  ;;  %v1211_v40 = vadd.f32 %v1203_v44, %v1199_v0 }
 0x48b   :  { %v1209_v38 = vadd.f32 %v1203_v44, %v1197_v63 }
 0x48d   :  { %1230 = vrot.lane.b32.xlu0 %v1209_v38, %s2741_s10  ;;  %1232 = vrot.lane.b32.xlu1 %v1210_v6, %s2741_s10 }
 0x491   :  { %1234 = vrot.lane.b32.xlu0 %v1211_v40, %s2741_s10 }
 0x4f1   :  { %v1225_v56 = vpop.permute.xlu1 %1224 }
 0x4f2   :  { %v1246_v59 = vadd.f32 %v1225_v56, %v2840_v28  ;;  %v3506_v56 = vpop.f32.mrf.mxu1 }
 0x4f4   :  { %v1254_v27 = vsub.f32 0.0, %v1246_v59  ;;  %v3508_v59 = vpop.f32.mrf.mxu1 }
 0x4f5   :  { %v1227_v20 = vpop.permute.xlu0 %1226  ;;  %v1221_v22 = vpop.permute.xlu1 %1220 }
 0x4f6   :  { %v1264_v60 = vmul.f32 1.442695, %v1254_v27  ;;  %v1247_v19 = vadd.f32 %v1227_v20, %v2846_v36  ;;  %v1244_v11 = vadd.f32 %v1221_v22, %v2842_v32  ;;  %v3510_v27 = vpop.f32.mrf.mxu1 }
 0x4f8   :  { %2695 = vpow2.f32 %v1264_v60  ;;  %v1255_v2 = vsub.f32 0.0, %v1247_v19  ;;  %v1252_v51 = vsub.f32 0.0, %v1244_v11  ;;  %v3512_v20 = vpop.f32.mrf.mxu1 }
 0x4f9   :  { %v1223_v37 = vpop.permute.xlu0 %1222 }
 0x4fa   :  { %v1266_v45 = vmul.f32 1.442695, %v1255_v2  ;;  %v1260_v17 = vmul.f32 1.442695, %v1252_v51  ;;  %v1245_v43 = vadd.f32 %v1223_v37, %v2850_v39  ;;  %v3514_v22 = vpop.f32.mrf.mxu1 }
 0x4fb   :  { %v1229_v61 = vpop.permute.xlu1 %1228 }
 0x4fc   :  { %2697 = vpow2.f32 %v1266_v45  ;;  %v1253_v1 = vsub.f32 0.0, %v1245_v43  ;;  %v1248_v28 = vadd.f32 %v1229_v61, %v2856_v46  ;;  %v3516_v60 = vpop.f32.mrf.mxu1  ;;  %v1448_v45 = vsub.s32 6, %v2829_v16 }
 0x4fd   :  { %2699 = vpow2.f32 %v1260_v17 }
 0x4fe   :  { %v1262_v33 = vmul.f32 1.442695, %v1253_v1  ;;  %v1256_v8 = vsub.f32 0.0, %v1248_v28  ;;  %v3518_v19 = vpop.f32.mrf.mxu1  ;;  %v1449_v43 = vrot.slane %v3474_v24, %v1448_v45  ;;  %v1460_v1 = vsub.s32 7, %v2829_v16 }
 0x4ff   :  { %v1231_v47 = vpop.permute.xlu0 %1230  ;;  %v1233_v36 = vpop.permute.xlu1 %1232 }
 0x500   :  { %2701 = vpow2.f32 %v1262_v33  ;;  %v1268_v32 = vmul.f32 1.442695, %v1256_v8  ;;  %v1249_v4 = vadd.f32 %v1231_v47, %v2862_v52  ;;  %v1250_v15 = vadd.f32 %v1233_v36, %v2860_v50  ;;  %v3520_v11 = vpop.f32.mrf.mxu1 }
 0x501   :  { %v3530_v8 = vrot.slane %v3474_v24, %v1460_v1 }
 0x502   :  { %2703 = vpow2.f32 %v1268_v32  ;;  %v1257_v62 = vsub.f32 0.0, %v1249_v4  ;;  %v1258_v23 = vsub.f32 0.0, %v1250_v15  ;;  %v2444_v2 = vpop.f32.mrf.mxu1 }
 0x503   :  { %v1235_v39 = vpop.permute.xlu0 %1234  ;;  %v1452_v28 = vmul.f32 %v2444_v2, %v1449_v43 }
 0x504   :  { %v1270_v44 = vmul.f32 1.442695, %v1257_v62  ;;  %v1272_v5 = vmul.f32 1.442695, %v1258_v23  ;;  %v1251_v34 = vadd.f32 %v1235_v39, %v2868_v53  ;;  %v1415_v51 = vpop.f32.mrf.mxu1  ;;  %v2321_v62 = vld [vmem:[%s3901_s2 + $0x58] sm:$0xff] }
 0x505   :  { %v2696_v46 = vpop.eup %2695  ;;  %v1450_v36 = vmul.f32 %v1449_v43, %v1415_v51  ;;  %v1464_v15 = vadd.f32 %v3530_v8, %v1452_v28 }
 0x506   :  { %v1278_v54 = vadd.f32 1.0, %v2696_v46  ;;  %2705 = vpow2.f32 %v1270_v44  ;;  %v1259_v26 = vsub.f32 0.0, %v1251_v34  ;;  %v2445_v37 = vpop.f32.mrf.mxu1 }
 0x507   :  { %2707 = vpow2.f32 %v1272_v5  ;;  %v1453_v47 = vmul.f32 %v2445_v37, %v1449_v43  ;;  %v1647_v5 = vpack.c.bf16 %v2321_v62, %v2321_v62  ;;  %v1462_v46 = vadd.f32 %v3530_v8, %v1450_v36 }
 0x508   :  { %2709 = vrcp.f32 %v1278_v54  ;;  %v1274_v9 = vmul.f32 1.442695, %v1259_v26  ;;  %v1418_v17 = vpop.f32.mrf.mxu1 }
 0x509   :  { %v2698_v12 = vpop.eup %2697  ;;  %v1451_v23 = vmul.f32 %v1449_v43, %v1418_v17  ;;  %v1465_v44 = vadd.f32 %v3530_v8, %v1453_v47  ;;  %2534 = vmatprep.subr.msk.bf16.mxu0 %vm658_vm12, %v1647_v5 }
 0x50a   :  { %v2700_v41 = vpop.eup %2699  ;;  %v1279_v52 = vadd.f32 1.0, %v2698_v12  ;;  %2711 = vpow2.f32 %v1274_v9  ;;  %v2448_v61 = vpop.f32.mrf.mxu1 }
 0x50b   :  { %v1276_v50 = vadd.f32 1.0, %v2700_v41  ;;  %v1661_v41 = vsel %vm658_vm12, %v1647_v5, 0 }
 0x50c   :  { %2713 = vrcp.f32 %v1279_v52  ;;  %v1431_v33 = vpop.f32.mrf.mxu1  ;;  %2451 = vmatpush3.bf16.msra.mxu0 %v1661_v41 }
 0x50d   :  { %v2702_v57 = vpop.eup %2701  ;;  %2715 = vrcp.f32 %v1276_v50  ;;  %v1454_v54 = vmul.f32 %v1449_v43, %v1431_v33 }
 0x50e   :  { %v1277_v31 = vadd.f32 1.0, %v2702_v57  ;;  %v2449_v4 = vpop.f32.mrf.mxu1 }
 0x50f   :  { %v2704_v21 = vpop.eup %2703  ;;  %v1457_v51 = vmul.f32 %v2449_v4, %v1449_v43 }
 0x510   :  { %2717 = vrcp.f32 %v1277_v31  ;;  %v1280_v14 = vadd.f32 1.0, %v2704_v21  ;;  %v1434_v26 = vpop.f32.mrf.mxu1  ;;  %v1463_v31 = vadd.f32 %v3530_v8, %v1451_v23 }
 0x512   :  { %2719 = vrcp.f32 %v1280_v14  ;;  %v1455_v14 = vmul.f32 %v1449_v43, %v1434_v26 }
 0x513   :  { %v2706_v53 = vpop.eup %2705 }
 0x514   :  { %v2708_v58 = vpop.eup %2707  ;;  %v1281_v13 = vadd.f32 1.0, %v2706_v53  ;;  %v1467_v28 = vadd.f32 %v3530_v8, %v1455_v14 }
 0x515   :  { %v2710_v55 = vpop.eup %2709  ;;  %v1282_v7 = vadd.f32 1.0, %v2708_v58 }
 0x516   :  { %2721 = vrcp.f32 %v1281_v13  ;;  %1482 = vrot.lane.b32.xlu1 %v2710_v55, %s2740_s30  ;;  %v1466_v13 = vadd.f32 %v3530_v8, %v1454_v54 }
 0x517   :  { %v2712_v48 = vpop.eup %2711  ;;  %2723 = vrcp.f32 %v1282_v7  ;;  %v2319_v7 = vld [vmem:[%s3901_s2 + $0x48] sm:$0xff] }
 0x518   :  { %v1283_v29 = vadd.f32 1.0, %v2712_v48  ;;  %v2320_v48 = vld [vmem:[%s3901_s2 + $0x50] sm:$0xff] }
 0x519   :  { %v2714_v25 = vpop.eup %2713 }
 0x51a   :  { %v2716_v18 = vpop.eup %2715  ;;  %2725 = vrcp.f32 %v1283_v29  ;;  %1484 = vrot.lane.b32.xlu0 %v2714_v25, %s2740_s30  ;;  %v1456_v29 = vmul.f32 %v2448_v61, %v1449_v43 }
 0x51b   :  { %1478 = vrot.lane.b32.xlu1 %v2716_v18, %s2740_s30 }
 0x51c   :  { %v1468_v43 = vadd.f32 %v3530_v8, %v1456_v29 }
 0x51d   :  { %v2718_v63 = vpop.eup %2717 }
 0x51e   :  { %1480 = vrot.lane.b32.xlu0 %v2718_v63, %s2740_s30 }
 0x51f   :  { %v2720_v6 = vpop.eup %2719 }
 0x520   :  { %1486 = vrot.lane.b32.xlu1 %v2720_v6, %s2740_s30  ;;  %v1646_v6 = vpack.c.bf16 %v2320_v48, %v2319_v7 }
 0x522   :  { %2452 = vmatprep.subr.bf16.mxu0 %v1646_v6 }
 0x523   :  { %v2722_v0 = vpop.eup %2721  ;;  %2453 = vmatpush3.bf16.msra.mxu0 %v1646_v6 }
 0x524   :  { %v2724_v38 = vpop.eup %2723  ;;  %1488 = vrot.lane.b32.xlu0 %v2722_v0, %s2740_s30 }
 0x525   :  { %1490 = vrot.lane.b32.xlu1 %v2724_v38, %s2740_s30 }
 0x527   :  { %v2726_v40 = vpop.eup %2725 }
 0x528   :  { %1492 = vrot.lane.b32.xlu0 %v2726_v40, %s2740_s30 }
 0x588   :  { %v1483_v32 = vpop.permute.xlu1 %1482 }
 0x589   :  { %v1504_v39 = vmul.f32 %v1483_v32, %v1464_v15 }
 0x58b   :  { %v1516_v50 = vrot.slane %v1504_v39, 7  ;;  %v1540_v25 = vrot.slane %v1504_v39, 1 }
 0x58c   :  { %v1485_v34 = vpop.permute.xlu0 %1484 }
 0x58d   :  { %v1505_v9 = vmul.f32 %v1485_v34, %v1465_v44  ;;  %v1479_v12 = vpop.permute.xlu1 %1478 }
 0x58e   :  { %v3540_v52 = vmul.f32 %v1479_v12, %v1462_v46  ;;  %v1469_v12 = vadd.f32 %v3530_v8, %v1457_v51 }
 0x58f   :  { %v1517_v57 = vrot.slane %v1505_v9, 7  ;;  %v2635_v21 = vpack.i.bf16 %v1505_v9, %v1504_v39  ;;  %v1541_v37 = vrot.slane %v1505_v9, 1 }
 0x590   :  { %v1481_v53 = vpop.permute.xlu0 %1480  ;;  %v1538_v18 = vrot.slane %v3540_v52, 1  ;;  %v1514_v17 = vrot.slane %v3540_v52, 7 }
 0x591   :  { %v1503_v58 = vmul.f32 %v1481_v53, %v1463_v31  ;;  %2636 = vrot.lane.b32.xlu0 %v2635_v21, %s2741_s10  ;;  %v3547_v55 = vsel %vm516_vm1, %v1516_v50, %v1517_v57  ;;  %v1550_v46 = vsel %vm541_vm3, %v1540_v25, %v1541_v37 }
 0x592   :  { %v1487_v63 = vpop.permute.xlu1 %1486 }
 0x593   :  { %v1515_v0 = vrot.slane %v1503_v58, 7  ;;  %v1539_v38 = vrot.slane %v1503_v58, 1  ;;  %v1506_v40 = vmul.f32 %v1487_v63, %v1466_v13  ;;  %v2640_v2 = vpack.i.bf16 %v1503_v58, %v3540_v52 }
 0x595   :  { %v1518_v33 = vrot.slane %v1506_v40, 7  ;;  %v1542_v47 = vrot.slane %v1506_v40, 1  ;;  %2641 = vrot.lane.b32.xlu1 %v2640_v2, %s2741_s10  ;;  %v1551_v61 = vsel %vm541_vm3, %v1539_v38, %v1540_v25  ;;  %v1552_v36 = vsel %vm541_vm3, %v1538_v18, %v1539_v38 }
 0x596   :  { %v1489_v32 = vpop.permute.xlu0 %1488  ;;  %v2645_v4 = vpack.i.bf16 %v1551_v61, %v1552_v36  ;;  %v1527_v15 = vsel %vm516_vm1, %v1515_v0, %v1516_v50  ;;  %v1528_v62 = vsel %vm516_vm1, %v1514_v17, %v1515_v0 }
 0x597   :  { %v1507_v23 = vmul.f32 %v1489_v32, %v1467_v28  ;;  %v1491_v39 = vpop.permute.xlu1 %1490  ;;  %v1549_v44 = vsel %vm541_vm3, %v1541_v37, %v1542_v47  ;;  %v3573_v5 = vsel %vm516_vm1, %v1517_v57, %v1518_v33 }
 0x598   :  { %v1508_v34 = vmul.f32 %v1491_v39, %v1468_v43  ;;  %v1557_v54 = vsel %vm2947_vm6, %v1549_v44, 0.0  ;;  %vm2127_vm6 = vcmask 15360  }
 0x599   :  { %v1519_v26 = vrot.slane %v1507_v23, 7  ;;  %v1543_v9 = vrot.slane %v1507_v23, 1  ;;  %2646 = vrot.lane.b32.xlu1 %v2645_v4, %s2742_s17  ;;  %v2650_v41 = vpack.i.bf16 %v1557_v54, %v1550_v46  ;;  %v2660_v57 = vpack.i.bf16 %v1507_v23, %v1506_v40 }
 0x59a   :  { %v1520_v52 = vrot.slane %v1508_v34, 7  ;;  %v1544_v50 = vrot.slane %v1508_v34, 1  ;;  %v1493_v31 = vpop.permute.xlu0 %1492 }
 0x59b   :  { %v1509_v21 = vmul.f32 %v1493_v31, %v1469_v12  ;;  %2651 = vrot.lane.b32.xlu0 %v2650_v41, %s2742_s17  ;;  %v1548_v14 = vsel %vm541_vm3, %v1542_v47, %v1543_v9  ;;  %v1524_v35 = vsel %vm516_vm1, %v1518_v33, %v1519_v26 }
 0x59c   :  { %v1547_v53 = vsel %vm541_vm3, %v1543_v9, %v1544_v50  ;;  %v1523_v8 = vsel %vm516_vm1, %v1519_v26, %v1520_v52 }
 0x59d   :  { %v1521_v58 = vrot.slane %v1509_v21, 7  ;;  %v1545_v13 = vrot.slane %v1509_v21, 1  ;;  %2661 = vrot.lane.b32.xlu1 %v2660_v57, %s2741_s10  ;;  %v2655_v7 = vpack.i.bf16 %v1509_v21, %v1508_v34  ;;  %v2665_v48 = vpack.i.bf16 %v1547_v53, %v1548_v14 }
 0x59f   :  { %2656 = vrot.lane.b32.xlu0 %v2655_v7, %s2741_s10  ;;  %v1546_v29 = vsel %vm541_vm3, %v1544_v50, %v1545_v13  ;;  %v1553_v25 = vsel %vm541_vm3, %v1545_v13, %v1538_v18  ;;  %v1529_v63 = vsel %vm516_vm1, %v1521_v58, %v1514_v17  ;;  %v1522_v6 = vsel %vm516_vm1, %v1520_v52, %v1521_v58 }
 0x5a0   :  { %v1561_v0 = vsel %vm3009_vm10, %v1553_v25, 0.0  ;;  %v1530_v17 = vsel %vm3363_vm8, %v1529_v63, 0.0  ;;  %vm2744_vm1 = vmmov 0   ;;  %vm1909_vm3 = vcmask 523264  }
 0x5a1   :  { %2666 = vrot.lane.b32.xlu1 %v2665_v48, %s2742_s17  ;;  %v2670_v38 = vpack.i.bf16 %v1561_v0, %v1546_v29  ;;  %vm2152_vm10 = vcmask 1041408  }
 0x5a3   :  { %2671 = vrot.lane.b32.xlu0 %v2670_v38, %s2742_s17 }
 0x603   :  { %v2637_v2 = vpop.permute.xlu0 %2636 }
 0x604   :  { %v2639_v28 = vunpack.i.h.bf16 %v2637_v2  ;;  %v2638_v18 = vunpack.i.l.bf16 %v2637_v2 }
 0x606   :  { %v1628_v44 = vsel %vm622_vm4, %v1527_v15, %v2638_v18  ;;  %v1629_v34 = vsel %vm622_vm4, %v3547_v55, %v2639_v28  ;;  %v1534_v55 = vsel %vm3373_vm9, %v3573_v5, 0.0  ;;  %v3933_v28 = vsub.s32 1, %v2829_v16 }
 0x607   :  { %v2642_v40 = vpop.permute.xlu1 %2641 }
 0x608   :  { %v2644_v51 = vunpack.i.h.bf16 %v2642_v40  ;;  %v2643_v37 = vunpack.i.l.bf16 %v2642_v40  ;;  %v3932_v40 = vsub.s32 0, %v2829_v16 }
 0x60a   :  { %v1626_v10 = vsel %vm622_vm4, %v1530_v17, %v2643_v37  ;;  %v1627_v36 = vsel %vm622_vm4, %v1528_v62, %v2644_v51 }
 0x60b   :  { %v2647_v33 = vpop.permute.xlu1 %2646 }
 0x60c   :  { %v2649_v47 = vunpack.i.h.bf16 %v2647_v33  ;;  %v2648_v61 = vunpack.i.l.bf16 %v2647_v33 }
 0x60d   :  { %v2652_v32 = vpop.permute.xlu0 %2651 }
 0x60e   :  { %v1634_v43 = vsel %vm395_vm0, %v1626_v10, %v2648_v61  ;;  %v1635_v4 = vsel %vm395_vm0, %v1627_v36, %v2649_v47  ;;  %v2654_v23 = vunpack.i.h.bf16 %v2652_v32  ;;  %v2653_v39 = vunpack.i.l.bf16 %v2652_v32 }
 0x60f   :  { %v1642_v42 = vpack.c.bf16 %v1635_v4, %v1634_v43  ;;  %v2662_v46 = vpop.permute.xlu1 %2661 }
 0x610   :  { %v1637_v54 = vsel %vm395_vm0, %v1629_v34, %v2654_v23  ;;  %v1636_v26 = vsel %vm395_vm0, %v1628_v44, %v2653_v39  ;;  %v2664_v62 = vunpack.i.h.bf16 %v2662_v46  ;;  %v2663_v12 = vunpack.i.l.bf16 %v2662_v46 }
 0x611   :  { %v1643_v9 = vpack.c.bf16 %v1637_v54, %v1636_v26  ;;  %v2657_v41 = vpop.permute.xlu0 %2656  ;;  %2454 = vmatprep.mubr.msk.bf16.mxu0 %vm645_vm5, %v1642_v42 }
 0x612   :  { %v2659_v52 = vunpack.i.h.bf16 %v2657_v41  ;;  %v2658_v50 = vunpack.i.l.bf16 %v2657_v41  ;;  %v1630_v57 = vsel %vm622_vm4, %v1534_v55, %v2663_v12  ;;  %v1631_v14 = vsel %vm622_vm4, %v1524_v35, %v2664_v62  ;;  %v1800_v35 = vld [vmem:[%s3902_s3] sm:$0xff] }
 0x613   :  { %2455 = vmatmul.mubr.msk.bf16.vlgmr.msra.gmra.mxu0 %vm645_vm5, %v1643_v9  ;;  %v2667_v15 = vpop.permute.xlu1 %2666 }
 0x614   :  { %v2669_v31 = vunpack.i.h.bf16 %v2667_v15  ;;  %v2668_v21 = vunpack.i.l.bf16 %v2667_v15  ;;  %v1632_v29 = vsel %vm622_vm4, %v1523_v8, %v2658_v50  ;;  %v1633_v25 = vsel %vm622_vm4, %v1522_v6, %v2659_v52  ;;  %v1801_v8 = vld [vmem:[%s3902_s3 + $0x8] sm:$0xff] }
 0x615   :  { %v2672_v53 = vpop.permute.xlu0 %2671  ;;  %v1806_v38 = vpack.c.bf16 %v1801_v8, %v1800_v35  ;;  %v3639_v6 = vld [vmem:[%s3900_s6 + $0x8] sm:$0xff] }
 0x616   :  { %v1638_v58 = vsel %vm395_vm0, %v1630_v57, %v2668_v21  ;;  %v1639_v13 = vsel %vm395_vm0, %v1631_v14, %v2669_v31  ;;  %v2674_v7 = vunpack.i.h.bf16 %v2672_v53  ;;  %v2673_v48 = vunpack.i.l.bf16 %v2672_v53 }
 0x617   :  { %v1644_v63 = vpack.c.bf16 %v1639_v13, %v1638_v58  ;;  %2462 = vmatprep.subr.bf16.mxu1 %v1806_v38  ;;  %v1731_v2 = vrot.slane %v3639_v6, %v3932_v40  ;;  %v1743_v18 = vrot.slane %v3639_v6, %v3933_v28 }
 0x618   :  { %v1640_v3 = vsel %vm395_vm0, %v1632_v29, %v2673_v48  ;;  %v1641_v5 = vsel %vm395_vm0, %v1633_v25, %v2674_v7  ;;  %2463 = vmatpush3.bf16.msra.mxu1 %v1806_v38  ;;  %v729_v29 = vsub.s32 2, %v2829_v16 }
 0x619   :  { %v1645_v0 = vpack.c.bf16 %v1641_v5, %v1640_v3  ;;  %2458 = vmatprep.mubr.msk.bf16.mxu0 %vm645_vm5, %v1644_v63  ;;  %v741_v63 = vsub.s32 3, %v2829_v16  ;;  %v2121_v16 = vld [vmem:[%s3906_s8 + $0x10] sm:$0xff] }
 0x61a   :  { %v730_v25 = vrot.slane %v3474_v24, %v729_v29 }
 0x61b   :  { %2459 = vmatmul.mubr.msk.bf16.gmra.mxu0 %vm645_vm5, %v1645_v0  ;;  %v742_v5 = vrot.slane %v3474_v24, %v741_v63 }
 0x61c   :  { %v733_v3 = vmul.f32 %v3506_v56, %v730_v25  ;;  %v734_v0 = vmul.f32 %v3510_v27, %v730_v25  ;;  %v731_v35 = vmul.f32 %v730_v25, %v3508_v59  ;;  %v732_v8 = vmul.f32 %v730_v25, %v3512_v20 }
 0x61d   :  { %v738_v56 = vmul.f32 %v3518_v19, %v730_v25  ;;  %v735_v27 = vmul.f32 %v730_v25, %v3516_v60  ;;  %v736_v59 = vmul.f32 %v730_v25, %v3520_v11 }
 0x61e   :  { %v745_v38 = vadd.f32 %v742_v5, %v733_v3  ;;  %v746_v40 = vadd.f32 %v742_v5, %v734_v0  ;;  %v1887_v3 = vrot.slane %v3639_v6, %v729_v29  ;;  %v1899_v0 = vrot.slane %v3639_v6, %v741_v63 }
 0x620   :  { %v754_v28 = vmax.f32 %v746_v40, 0.0 }
 0x6d3   :  { %v2456_v51 = vpop.f32.mrf.mxu0 }
 0x6d4   :  { %v1734_v37 = vmul.f32 %v2456_v51, %v1731_v2  ;;  %v744_v51 = vadd.f32 %v742_v5, %v732_v8 }
 0x6d5   :  { %v1697_v33 = vpop.f32.mrf.mxu0 }
 0x6d6   :  { %v1732_v17 = vmul.f32 %v1731_v2, %v1697_v33  ;;  %v1746_v61 = vadd.f32 %v1743_v18, %v1734_v37  ;;  %v753_v37 = vmax.f32 %v745_v38, 0.0  ;;  %v737_v33 = vmul.f32 %v3514_v22, %v730_v25 }
 0x6d7   :  { %v2457_v47 = vpop.f32.mrf.mxu0  ;;  %v750_v22 = vadd.f32 %v742_v5, %v738_v56 }
 0x6d8   :  { %v1735_v10 = vmul.f32 %v2457_v47, %v1731_v2  ;;  %v1744_v32 = vadd.f32 %v1743_v18, %v1732_v17  ;;  %v1754_v39 = vmax.f32 %v1746_v61, 0.0  ;;  %v752_v61 = vmax.f32 %v744_v51, 0.0 }
 0x6d9   :  { %v1700_v36 = vpop.f32.mrf.mxu0 }
 0x6da   :  { %v1747_v43 = vadd.f32 %v1743_v18, %v1735_v10  ;;  %v1733_v4 = vmul.f32 %v1731_v2, %v1700_v36  ;;  %v1752_v54 = vmax.f32 %v1744_v32, 0.0 }
 0x6db   :  { %v2460_v23 = vpop.f32.mrf.mxu0 }
 0x6dc   :  { %v1755_v44 = vmax.f32 %v1747_v43, 0.0  ;;  %v1745_v34 = vadd.f32 %v1743_v18, %v1733_v4  ;;  %v1738_v42 = vmul.f32 %v2460_v23, %v1731_v2  ;;  %v749_v23 = vadd.f32 %v742_v5, %v737_v33 }
 0x6dd   :  { %v1713_v46 = vpop.f32.mrf.mxu0 }
 0x6de   :  { %v1753_v26 = vmax.f32 %v1745_v34, 0.0  ;;  %v1736_v9 = vmul.f32 %v1731_v2, %v1713_v46  ;;  %v2680_v62 = vpack.i.bf16 %v1755_v44, %v1754_v39  ;;  %v1750_v41 = vadd.f32 %v1743_v18, %v1738_v42 }
 0x6df   :  { %v2461_v12 = vpop.f32.mrf.mxu0  ;;  %v747_v44 = vadd.f32 %v742_v5, %v735_v27  ;;  %v748_v34 = vadd.f32 %v742_v5, %v736_v59  ;;  %v757_v11 = vmax.f32 %v749_v23, 0.0  ;;  %v758_v46 = vmax.f32 %v750_v22, 0.0  ;;  %v1908_v27 = vld [vmem:[%s3903_s7] sm:$0x3]  ;;  %v2058_v23 = vld [vmem:[%s3905_s5 + $0x68] sm:$0xff] }
 0x6e0   :  { %v1739_v52 = vmul.f32 %v2461_v12, %v1731_v2  ;;  %2681 = vrot.lane.b32.xlu0 %v2680_v62, %s2741_s10  ;;  %v2675_v50 = vpack.i.bf16 %v1753_v26, %v1752_v54  ;;  %v1748_v55 = vadd.f32 %v1743_v18, %v1736_v9  ;;  %v1758_v57 = vmax.f32 %v1750_v41, 0.0  ;;  %v1983_v59 = vld [vmem:[%s3904_s4] sm:$0xff] }
 0x6e1   :  { %v1716_v15 = vpop.f32.mrf.mxu0  ;;  %v755_v9 = vmax.f32 %v747_v44, 0.0  ;;  %v756_v62 = vmax.f32 %v748_v34, 0.0  ;;  %v2053_v34 = vld [vmem:[%s3905_s5 + $0x40] sm:$0xff] }
 0x6e2   :  { %v1751_v31 = vadd.f32 %v1743_v18, %v1739_v52  ;;  %v1737_v21 = vmul.f32 %v1731_v2, %v1716_v15  ;;  %2676 = vrot.lane.b32.xlu1 %v2675_v50, %s2741_s10  ;;  %v1756_v58 = vmax.f32 %v1748_v55, 0.0  ;;  %v743_v2 = vadd.f32 %v742_v5, %v731_v35 }
 0x6e4   :  { %v1759_v14 = vmax.f32 %v1751_v31, 0.0  ;;  %v1749_v53 = vadd.f32 %v1743_v18, %v1737_v21  ;;  %v751_v24 = vmax.f32 %v743_v2, 0.0 }
 0x6e6   :  { %v1757_v13 = vmax.f32 %v1749_v53, 0.0  ;;  %v2690_v7 = vpack.i.bf16 %v1759_v14, %v1758_v57  ;;  %v2743_v14 = vmov 0.0  }
 0x6e7   :  { %2472 = vmatprep.subr.mxu0 %v2743_v14  ;;  %2497 = vmatprep.subr.bf16.mxu1 %v2743_v14 }
 0x6e8   :  { %2691 = vrot.lane.b32.xlu0 %v2690_v7, %s2741_s10  ;;  %v2685_v48 = vpack.i.bf16 %v1757_v13, %v1756_v58  ;;  %2488 = vmatprep.mubr.msk.f32.mxu0 %vm2744_vm1, %v2743_v14 }
 0x6ea   :  { %2686 = vrot.lane.b32.xlu1 %v2685_v48, %s2741_s10 }
 0x752   :  { %v2682_v18 = vpop.permute.xlu0 %2681 }
 0x753   :  { %v2684_v17 = vunpack.i.h.bf16 %v2682_v18  ;;  %v2683_v47 = vunpack.i.l.bf16 %v2682_v18 }
 0x754   :  { %v2677_v20 = vpop.permute.xlu1 %2676 }
 0x755   :  { %v1795_v10 = vsel %vm622_vm4, %v754_v28, %v2684_v17  ;;  %v1794_v36 = vsel %vm622_vm4, %v753_v37, %v2683_v47  ;;  %v2679_v32 = vunpack.i.h.bf16 %v2677_v20  ;;  %v2678_v43 = vunpack.i.l.bf16 %v2677_v20  ;;  %v1984_v20 = vld [vmem:[%s3904_s4 + $0x8] sm:$0xff] }
 0x756   :  { %v1803_v4 = vpack.c.bf16 %v1795_v10, %v1794_v36  ;;  %v1986_v10 = vpack.c.bf16 %v1984_v20, %v1983_v59  ;;  %v2059_v36 = vld [vmem:[%s3905_s5 + $0x70] sm:$0xff]  ;;  %v2120_v20 = vld [vmem:[%s3906_s8 + $0x8] sm:$0xff] }
 0x757   :  { %v1793_v19 = vsel %vm622_vm4, %v752_v61, %v2679_v32  ;;  %v1792_v39 = vsel %vm622_vm4, %v751_v24, %v2678_v43  ;;  %v2060_v32 = vld [vmem:[%s3905_s5 + $0x78] sm:$0xff]  ;;  %v2057_v43 = vld [vmem:[%s3905_s5 + $0x60] sm:$0xff] }
 0x758   :  { %v1802_v42 = vpack.c.bf16 %v1793_v19, %v1792_v39  ;;  %v2068_v22 = vpack.c.bf16 %v2058_v23, %v2057_v43  ;;  %v2055_v19 = vld [vmem:[%s3905_s5 + $0x50] sm:$0xff]  ;;  %v2056_v39 = vld [vmem:[%s3905_s5 + $0x58] sm:$0xff] }
 0x759   :  { %v2067_v44 = vpack.c.bf16 %v2056_v39, %v2055_v19 }
 0x75a   :  { %2464 = vmatprep.mubr.msk.bf16.mxu1 %vm395_vm0, %v1802_v42  ;;  %v2692_v60 = vpop.permute.xlu0 %2691  ;;  %v2054_v42 = vld [vmem:[%s3905_s5 + $0x48] sm:$0xff] }
 0x75b   :  { %v2694_v54 = vunpack.i.h.bf16 %v2692_v60  ;;  %v2693_v26 = vunpack.i.l.bf16 %v2692_v60  ;;  %2465 = vmatmul.mubr.msk.bf16.vlgmr.msra.gmra.mxu1 %vm395_vm0, %v1803_v4  ;;  %v2069_v4 = vpack.c.bf16 %v2060_v32, %v2059_v36  ;;  %v2066_v60 = vpack.c.bf16 %v2054_v42, %v2053_v34  ;;  %v2125_v36 = vld [vmem:[%s3906_s8 + $0x30] sm:$0xff]  ;;  %v2126_v32 = vld [vmem:[%s3906_s8 + $0x38] sm:$0xff]  ;;  %v2733_v42 = vld [vmem:[%s3899_s0] sm:$0xff] }
 0x75c   :  { %v2687_v12 = vpop.permute.xlu1 %2686 }
 0x75d   :  { %v1799_v41 = vsel %vm622_vm4, %v758_v46, %v2694_v54  ;;  %v1798_v52 = vsel %vm622_vm4, %v757_v11, %v2693_v26  ;;  %v2689_v50 = vunpack.i.h.bf16 %v2687_v12  ;;  %v2688_v15 = vunpack.i.l.bf16 %v2687_v12  ;;  %2498 = vmatpush3.bf16.msra.mxu1 %v2069_v4  ;;  %v2051_v11 = vld [vmem:[%s3905_s5 + $0x30] sm:$0xff]  ;;  %v2052_v46 = vld [vmem:[%s3905_s5 + $0x38] sm:$0xff]  ;;  %v2049_v12 = vld [vmem:[%s3905_s5 + $0x20] sm:$0xff] }
 0x75e   :  { %v1805_v55 = vpack.c.bf16 %v1799_v41, %v1798_v52  ;;  %2499 = vmatprep.subr.bf16.mxu1 %v2743_v14  ;;  %v2065_v54 = vpack.c.bf16 %v2052_v46, %v2051_v11  ;;  %v2050_v41 = vld [vmem:[%s3905_s5 + $0x28] sm:$0xff]  ;;  %v2047_v52 = vld [vmem:[%s3905_s5 + $0x10] sm:$0xff] }
 0x75f   :  { %v1796_v31 = vsel %vm622_vm4, %v755_v9, %v2688_v15  ;;  %v1797_v21 = vsel %vm622_vm4, %v756_v62, %v2689_v50  ;;  %v2064_v50 = vpack.c.bf16 %v2050_v41, %v2049_v12  ;;  %v2048_v15 = vld [vmem:[%s3905_s5 + $0x18] sm:$0xff] }
 0x760   :  { %v1804_v57 = vpack.c.bf16 %v1797_v21, %v1796_v31  ;;  %v2045_v31 = vld [vmem:[%s3905_s5] sm:$0xff]  ;;  %v2046_v21 = vld [vmem:[%s3905_s5 + $0x8] sm:$0xff] }
 0x761   :  { %2500 = vmatpush3.bf16.msra.mxu1 %v2068_v22  ;;  %v2732_v22 = vld [vmem:[%s3899_s0 + $0x8] sm:$0xff] }
 0x762   :  { %2468 = vmatprep.mubr.msk.bf16.mxu1 %vm395_vm0, %v1804_v57  ;;  %2501 = vmatprep.subr.bf16.mxu1 %v2743_v14  ;;  %v2062_v57 = vpack.c.bf16 %v2046_v21, %v2045_v31  ;;  %v2737_v21 = vld [vmem:[%s3899_s0 + $0x20] sm:$0xff] }
 0x763   :  { %2469 = vmatmul.mubr.msk.bf16.gmra.mxu1 %vm395_vm0, %v1805_v55  ;;  %v2063_v55 = vpack.c.bf16 %v2048_v15, %v2047_v52 }
 0x764   :  { %2513 = vmatprep.mubr.msk.bf16.mxu1 %vm2744_vm1, %v2743_v14 }
 0x765   :  { %2502 = vmatpush3.bf16.msra.mxu1 %v2067_v44 }
 0x766   :  { %2503 = vmatprep.subr.bf16.mxu1 %v2743_v14 }
 0x769   :  { %2504 = vmatpush3.bf16.msra.mxu1 %v2066_v60 }
 0x76a   :  { %2505 = vmatprep.subr.bf16.mxu1 %v2743_v14 }
 0x76d   :  { %2506 = vmatpush3.bf16.msra.mxu1 %v2065_v54 }
 0x76e   :  { %2507 = vmatprep.subr.bf16.mxu1 %v2743_v14 }
 0x771   :  { %2508 = vmatpush3.bf16.msra.mxu1 %v2064_v50  ;;  %v2736_v50 = vld [vmem:[%s3899_s0 + $0x28] sm:$0xff] }
 0x772   :  { %2509 = vmatprep.subr.bf16.mxu1 %v2743_v14 }
 0x775   :  { %2510 = vmatpush3.bf16.msra.mxu1 %v2063_v55 }
 0x776   :  { %2511 = vmatprep.subr.bf16.mxu1 %v2743_v14 }
 0x779   :  { %2512 = vmatpush3.bf16.msra.mxu1 %v2062_v57 }
 0x81b   :  { %v2466_v53 = vpop.f32.mrf.mxu1 }
 0x81c   :  { %v1890_v63 = vmul.f32 %v2466_v53, %v1887_v3  ;;  %v1990_v53 = vrot.slane %v3639_v6, %v1448_v45  ;;  %v2119_v45 = vld [vmem:[%s3906_s8] sm:$0xff] }
 0x81d   :  { %v1853_v58 = vpop.f32.mrf.mxu1 }
 0x81e   :  { %v3709_v17 = vadd.f32 %v1899_v0, %v1890_v63  ;;  %v1888_v47 = vmul.f32 %v1887_v3, %v1853_v58 }
 0x81f   :  { %v2467_v13 = vpop.f32.mrf.mxu1 }
 0x820   :  { %v1891_v28 = vmul.f32 %v2467_v13, %v1887_v3  ;;  %v3717_v61 = vadd.f32 %v1899_v0, %v1888_v47 }
 0x821   :  { %v1856_v7 = vpop.f32.mrf.mxu1 }
 0x822   :  { %v3705_v33 = vadd.f32 %v1899_v0, %v1891_v28  ;;  %v1889_v56 = vmul.f32 %v1887_v3, %v1856_v7  ;;  %v2038_v7 = vrot.slane %v3639_v6, %v1190_v30  ;;  %v2073_v30 = vrot.slane %v3639_v6, %v1460_v1  ;;  %v2122_v1 = vld [vmem:[%s3906_s8 + $0x18] sm:$0xff] }
 0x823   :  { %v2470_v48 = vpop.f32.mrf.mxu1 }
 0x824   :  { %v1894_v35 = vmul.f32 %v2470_v48, %v1887_v3  ;;  %v3713_v24 = vadd.f32 %v1899_v0, %v1889_v56 }
 0x825   :  { %v1869_v25 = vpop.f32.mrf.mxu1 }
 0x826   :  { %v3693_v51 = vadd.f32 %v1899_v0, %v1894_v35  ;;  %v1892_v37 = vmul.f32 %v1887_v3, %v1869_v25 }
 0x827   :  { %v2471_v5 = vpop.f32.mrf.mxu1 }
 0x828   :  { %v1895_v8 = vmul.f32 %v2471_v5, %v1887_v3  ;;  %v3701_v18 = vadd.f32 %v1899_v0, %v1892_v37 }
 0x829   :  { %v1872_v38 = vpop.f32.mrf.mxu1 }
 0x82a   :  { %v3691_v40 = vadd.f32 %v1899_v0, %v1895_v8  ;;  %v1893_v2 = vmul.f32 %v1887_v3, %v1872_v38  ;;  %v2043_v3 = vrot.slane %v3639_v6, %v1202_v49  ;;  %v2123_v6 = vld [vmem:[%s3906_s8 + $0x20] sm:$0xff] }
 0x82c   :  { %2473 = vmatpush3.msra.mxu0 %v3691_v40  ;;  %v3697_v29 = vadd.f32 %v1899_v0, %v1893_v2 }
 0x82d   :  { %2474 = vmatprep.subr.mxu0 %v2743_v14 }
 0x82e   :  { %2475 = vmatpush3.msra.mxu0 %v3693_v51 }
 0x82f   :  { %2476 = vmatprep.subr.mxu0 %v2743_v14 }
 0x830   :  { %2477 = vmatpush3.msra.mxu0 %v3697_v29 }
 0x831   :  { %2478 = vmatprep.subr.mxu0 %v2743_v14 }
 0x832   :  { %2479 = vmatpush3.msra.mxu0 %v3701_v18 }
 0x833   :  { %2480 = vmatprep.subr.mxu0 %v2743_v14 }
 0x834   :  { %2481 = vmatpush3.msra.mxu0 %v3705_v33 }
 0x835   :  { %2482 = vmatprep.subr.mxu0 %v2743_v14 }
 0x836   :  { %2483 = vmatpush3.msra.mxu0 %v3709_v17 }
 0x837   :  { %2484 = vmatprep.subr.mxu0 %v2743_v14 }
 0x838   :  { %2485 = vmatpush3.msra.mxu0 %v3713_v24 }
 0x839   :  { %2486 = vmatprep.subr.mxu0 %v2743_v14 }
 0x83a   :  { %2487 = vmatpush3.msra.mxu0 %v3717_v61 }
 0x83b   :  { %2489 = vmatmul.mubr.msk.f32.vlgmr.msra.gmra.mxu0 %vm1909_vm3, %v1908_v27  ;;  %2491 = vmatprep.subr.bf16.mxu0 %v2743_v14 }
 0x83c   :  { %2493 = vmatprep.mubr.msk.bf16.mxu0 %vm2744_vm1, %v2743_v14  ;;  %2492 = vmatpush3.bf16.msra.mxu0 %v1986_v10  ;;  %v2124_v10 = vld [vmem:[%s3906_s8 + $0x28] sm:$0xff] }
 0x8fb   :  { %v1979_v26 = vpop.f32.mrf.mxu0 }
 0x8fc   :  { %v1985_v9 = vpack.c.bf16 %v1979_v26, %v1979_v26 }
 0x8fd   :  { %v2490_v62 = vpop.f32.mrf.mxu0 }
 0x8fe   :  { %2494 = vmatmul.mubr.msk.bf16.vlgmr.msra.gmra.mxu0 %vm395_vm0, %v1985_v9  ;;  %v2735_v62 = vld [vmem:[%s3899_s0 + $0x10] sm:$0xff] }
 0x8ff   :  { %2519 = vmatprep.mubr.msk.f32.mxu0 %vm2127_vm6, %v2119_v45 }
 0x9be   :  { %v2028_v58 = vpop.f32.mrf.mxu0 }
 0x9bf   :  { %v2029_v13 = vadd.f32 %v2028_v58, %v1990_v53 }
 0x9c0   :  { %v2495_v48 = vpop.f32.mrf.mxu0 }
 0x9c1   :  { %v2034_v25 = vmax.f32 %v2029_v13, 0.0  ;;  %v2738_v13 = vld [vmem:[%s3899_s0 + $0x38] sm:$0xff] }
 0x9c2   :  { %v2031_v5 = vpop.f32.mrf.mxu0 }
 0x9c3   :  { %v2039_v0 = vmul.f32 %v2038_v7, %v2034_v25  ;;  %v2739_v25 = vld [vmem:[%s3899_s0 + $0x30] sm:$0xff] }
 0x9c4   :  { %v2496_v14 = vpop.f32.mrf.mxu0 }
 0x9c5   :  { %v2044_v35 = vadd.f32 %v2043_v3, %v2039_v0 }
 0x9c7   :  { %v2061_v8 = vpack.c.bf16 %v2044_v35, %v2044_v35 }
 0x9c9   :  { %2514 = vmatmul.mubr.bf16.vlgmr.msra.gmra.mxu1 %v2061_v8 }
 0xa89   :  { %v2108_v38 = vpop.f32.mrf.mxu1 }
 0xa8a   :  { %v2109_v2 = vadd.f32 %v2108_v38, %v2073_v30 }
 0xa8b   :  { %v2515_v49 = vpop.f32.mrf.mxu1 }
 0xa8c   :  { %v2114_v37 = vsub.f32 0.0, %v2109_v2 }
 0xa8d   :  { %v2111_v28 = vpop.f32.mrf.mxu1 }
 0xa8e   :  { %v2115_v63 = vmul.f32 1.442695, %v2114_v37 }
 0xa8f   :  { %v2516_v56 = vpop.f32.mrf.mxu1 }
 0xa90   :  { %2727 = vpow2.f32 %v2115_v63 }
 0xa9d   :  { %v2728_v47 = vpop.eup %2727 }
 0xa9e   :  { %v2117_v27 = vadd.f32 1.0, %v2728_v47 }
 0xaa0   :  { %2729 = vrcp.f32 %v2117_v27 }
 0xaad   :  { %v2730_v59 = vpop.eup %2729 }
 0xaae   :  { %2517 = vmatprep.subr.msk.mxu0 %vm2152_vm10, %v2730_v59 }
 0xaaf   :  { %2518 = vmatpush3.msk.msra.mxu0 %vm2152_vm10, %v2730_v59 }
 0xab0   :  { %2520 = vmatmul.mubr.msk.f32.vlgmr.msra.gmra.mxu0 %vm2127_vm6, %v2120_v20 }
 0xab1   :  { %2522 = vmatprep.mubr.msk.f32.mxu0 %vm2127_vm6, %v2121_v16 }
 0xab4   :  { %2523 = vmatmul.mubr.msk.f32.gmra.mxu0 %vm2127_vm6, %v2122_v1 }
 0xab5   :  { %2525 = vmatprep.mubr.msk.f32.mxu0 %vm2127_vm6, %v2123_v6 }
 0xab8   :  { %2526 = vmatmul.mubr.msk.f32.gmra.mxu0 %vm2127_vm6, %v2124_v10 }
 0xab9   :  { %2528 = vmatprep.mubr.msk.f32.mxu0 %vm2127_vm6, %v2125_v36 }
 0xabc   :  { %2529 = vmatmul.mubr.msk.f32.gmra.mxu0 %vm2127_vm6, %v2126_v32 }
 0xb70   :  { %v2521_v43 = vpop.f32.mrf.mxu0 }
 0xb71   :  { %v2262_v4 = vmul.f32 %v2521_v43, %v3713_v24 }
 0xb72   :  { %v2222_v23 = vpop.f32.mrf.mxu0 }
 0xb73   :  { %v2270_v19 = vadd.f32 %v2732_v22, %v2262_v4  ;;  %v2261_v39 = vmul.f32 %v2222_v23, %v3717_v61  ;;  %v2734_v61 = vld [vmem:[%s3899_s0 + $0x18] sm:$0xff] }
 0xb74   :  { %v2524_v44 = vpop.f32.mrf.mxu0 }
 0xb75   :  { %v2278_v34 = vmax.f32 %v2270_v19, 0.0  ;;  %v2269_v60 = vadd.f32 %v2733_v42, %v2261_v39  ;;  %v2264_v11 = vmul.f32 %v2524_v44, %v3705_v33 }
 0xb76   :  { %v2232_v46 = vpop.f32.mrf.mxu0 }
 0xb77   :  { %2286 = vst.msk [vmem:[%s3907_s9 + $0x8] sm:$0xff] %vm395_vm0, %v2278_v34  ;;  %v2277_v24 = vmax.f32 %v2269_v60, 0.0  ;;  %v2272_v54 = vadd.f32 %v2734_v61, %v2264_v11  ;;  %v2263_v26 = vmul.f32 %v2232_v46, %v3709_v17 }
 0xb78   :  { %v2527_v9 = vpop.f32.mrf.mxu0 }
 0xb79   :  { %2285 = vst.msk [vmem:[%s3907_s9] sm:$0xff] %vm395_vm0, %v2277_v24  ;;  %v2280_v33 = vmax.f32 %v2272_v54, 0.0  ;;  %v2271_v12 = vadd.f32 %v2735_v62, %v2263_v26  ;;  %v2266_v41 = vmul.f32 %v2527_v9, %v3697_v29 }
 0xb7a   :  { %v2242_v52 = vpop.f32.mrf.mxu0 }
 0xb7b   :  { %2288 = vst.msk [vmem:[%s3907_s9 + $0x18] sm:$0xff] %vm395_vm0, %v2280_v33  ;;  %v2279_v17 = vmax.f32 %v2271_v12, 0.0  ;;  %v2274_v15 = vadd.f32 %v2736_v50, %v2266_v41  ;;  %v2265_v55 = vmul.f32 %v2242_v52, %v3701_v18 }
 0xb7c   :  { %v2530_v31 = vpop.f32.mrf.mxu0 }
 0xb7d   :  { %2287 = vst.msk [vmem:[%s3907_s9 + $0x10] sm:$0xff] %vm395_vm0, %v2279_v17  ;;  %v2282_v29 = vmax.f32 %v2274_v15, 0.0  ;;  %v2273_v57 = vadd.f32 %v2737_v21, %v2265_v55  ;;  %v2268_v53 = vmul.f32 %v2530_v31, %v3691_v40 }
 0xb7e   :  { %v2252_v58 = vpop.f32.mrf.mxu0 }
 0xb7f   :  { %2290 = vst.msk [vmem:[%s3907_s9 + $0x28] sm:$0xff] %vm395_vm0, %v2282_v29  ;;  %v2281_v18 = vmax.f32 %v2273_v57, 0.0  ;;  %v2276_v7 = vadd.f32 %v2738_v13, %v2268_v53  ;;  %v2267_v48 = vmul.f32 %v2252_v58, %v3693_v51 }
 0xb81   :  { %2289 = vst.msk [vmem:[%s3907_s9 + $0x20] sm:$0xff] %vm395_vm0, %v2281_v18  ;;  %v2284_v40 = vmax.f32 %v2276_v7, 0.0  ;;  %v2275_v3 = vadd.f32 %v2739_v25, %v2267_v48 }
 0xb83   :  { %2292 = vst.msk [vmem:[%s3907_s9 + $0x38] sm:$0xff] %vm395_vm0, %v2284_v40  ;;  %v2283_v5 = vmax.f32 %v2275_v3, 0.0 }
 0xb85   :  { %2291 = vst.msk [vmem:[%s3907_s9 + $0x30] sm:$0xff] %vm395_vm0, %v2283_v5 }

</bundles_post_ra>
